<compile_context>
chip_gen: v6e
topology: v6e:2x2x1
jax: 0.10.0
libtpu: 0.0.40
codegen_flags: <defaults>
</compile_context>

<pallas_src>
import functools
import math

import jax
import jax.numpy as jnp
from jax.experimental import pallas as pl
from jax.experimental.pallas import tpu as pltpu

LN_EPS = 1e-5


def encoder_stack_kernel(x_ref, bias_ref,
                         wq_ref, bq_ref, wk_ref, bk_ref, wv_ref, bv_ref,
                         wo_ref, bo_ref,
                         g1_ref, be1_ref,
                         w1_ref, bf1_ref, w2_ref, bf2_ref,
                         g2_ref, be2_ref,
                         out_ref, act_ref, *, num_head, batch, seq):
    """One grid step == one EncoderLayer; residual stream stays in VMEM scratch."""
    H, B, S = num_head, batch, seq
    N, D = act_ref.shape                       # N = B * S
    Dh = D // H
    scale = 1.0 / math.sqrt(Dh)

    layer = pl.program_id(0)

    # Layer 0: load the embedded input into the resident activation scratch.
    @pl.when(layer == 0)
    def _():
        act_ref[...] = x_ref[...]

    x = act_ref[...]                            # f32 residual stream
    xb = x.astype(jnp.bfloat16)                 # bf16 operands for the MXU

    # ---- fused Q/K/V projections: one D-wide matmul each ----
    q = jnp.dot(xb, wq_ref[...], preferred_element_type=jnp.float32) + bq_ref[...]
    q = q * scale                               # fold softmax scale into Q (N,D)
    k = jnp.dot(xb, wk_ref[...], preferred_element_type=jnp.float32) + bk_ref[...]
    v = jnp.dot(xb, wv_ref[...], preferred_element_type=jnp.float32) + bv_ref[...]

    bias = bias_ref[...]                        # (B, 1, S) additive key-pad bias

    # ---- per-head attention (no concat relayouts); output projection is an
    #      MXU accumulation over heads instead of a merge-concat ----
    attn = jnp.zeros((N, D), jnp.float32)
    for h in range(H):                          # H is small; unrolled at trace time
        lo = h * Dh
        qh = q[:, lo:lo + Dh].astype(jnp.bfloat16).reshape(B, S, Dh)
        kh = k[:, lo:lo + Dh].astype(jnp.bfloat16).reshape(B, S, Dh)
        vh = v[:, lo:lo + Dh].astype(jnp.bfloat16).reshape(B, S, Dh)

        s = jnp.einsum('bqd,bkd->bqk', qh, kh,
                       preferred_element_type=jnp.float32)      # (B, S, S)
        s = s + bias                                            # broadcast over q
        m = jnp.max(s, axis=-1, keepdims=True)
        p = jnp.exp(s - m)
        p = p / jnp.sum(p, axis=-1, keepdims=True)              # exact division

        o = jnp.einsum('bqk,bkd->bqd', p.astype(jnp.bfloat16), vh,
                       preferred_element_type=jnp.float32)      # (B, S, Dh)

        attn = attn + jnp.dot(o.reshape(N, Dh).astype(jnp.bfloat16),
                              wo_ref[lo:lo + Dh, :],
                              preferred_element_type=jnp.float32)
    attn = attn + bo_ref[...]

    # dropout1: identity (eval mode)
    # ---- Add & LayerNorm 1 ----
    r1 = attn + x
    mu1 = jnp.mean(r1, axis=-1, keepdims=True)
    var1 = jnp.mean((r1 - mu1) ** 2, axis=-1, keepdims=True)
    ln1 = (r1 - mu1) * jax.lax.rsqrt(var1 + LN_EPS) * g1_ref[...] + be1_ref[...]

    # ---- Feed-forward: Linear -> ReLU -> dropout(identity) -> Linear ----
    hdn = jnp.dot(ln1.astype(jnp.bfloat16), w1_ref[...],
                  preferred_element_type=jnp.float32) + bf1_ref[...]
    hdn = jnp.maximum(hdn, 0.0)
    ffn = jnp.dot(hdn.astype(jnp.bfloat16), w2_ref[...],
                  preferred_element_type=jnp.float32) + bf2_ref[...]

    # dropout2: identity (eval mode)
    # ---- Add & LayerNorm 2 ----
    r2 = ffn + ln1
    mu2 = jnp.mean(r2, axis=-1, keepdims=True)
    var2 = jnp.mean((r2 - mu2) ** 2, axis=-1, keepdims=True)
    ln2 = (r2 - mu2) * jax.lax.rsqrt(var2 + LN_EPS) * g2_ref[...] + be2_ref[...]

    act_ref[...] = ln2                      # carry residual stream to next layer
    out_ref[...] = ln2.astype(out_ref.dtype)


_WEIGHT_NAMES = ["wq", "bq", "wk", "bk", "wv", "bv", "wo", "bo",
                 "g1", "be1", "w1", "bf1", "w2", "bf2", "g2", "be2"]


def encoder_stack(x, mask, stacked, num_head):
    """Run the whole EncoderLayer stack as ONE Pallas call (grid over layers)."""
    B, S, D = x.shape
    H = num_head
    assert D % H == 0
    L = stacked["wq"].shape[0]
    N = B * S

    x2 = x.reshape(N, D).astype(jnp.float32)
    # key-padding mask -> additive bias (0 keep / -1e9 masked); passed once,
    # broadcast over heads inside the kernel.
    bias = (mask.astype(jnp.float32) - 1.0) * 1e9          # (B, 1, S)

    kernel = functools.partial(encoder_stack_kernel,
                               num_head=H, batch=B, seq=S)

    def weight_spec(name):
        a = stacked[name]
        # leading layer dim squeezed; trailing dims = full extent (resident tile)
        return pl.BlockSpec((None,) + tuple(a.shape[1:]), lambda l: (l, 0, 0))

    in_specs = ([pl.BlockSpec((N, D), lambda l: (0, 0)),         # x: resident
                 pl.BlockSpec((B, 1, S), lambda l: (0, 0, 0))]   # bias: resident
                + [weight_spec(n) for n in _WEIGHT_NAMES])

    out = pl.pallas_call(
        kernel,
        grid=(L,),
        in_specs=in_specs,
        out_specs=pl.BlockSpec((N, D), lambda l: (0, 0)),
        out_shape=jax.ShapeDtypeStruct((N, D), jnp.float32),
        scratch_shapes=[pltpu.VMEM((N, D), jnp.float32)],        # residual stream
        compiler_params=pltpu.CompilerParams(
            dimension_semantics=("arbitrary",),      # layers are sequential
            vmem_limit_bytes=32 * 1024 * 1024),      # fits v7x's 64 MiB VMEM
    )(x2, bias, *[stacked[n] for n in _WEIGHT_NAMES])

    return out.reshape(B, S, D)


def sinusoidal_pos_encoding(max_len, d):
    pos = jnp.arange(max_len, dtype=jnp.float32)[:, None]
    i = jnp.arange(0, d, 2, dtype=jnp.float32)
    angle = pos / jnp.power(10000.0, i / d)
    pe = jnp.zeros((max_len, d), jnp.float32)
    pe = pe.at[:, 0::2].set(jnp.sin(angle))
    pe = pe.at[:, 1::2].set(jnp.cos(angle))
    return pe


def init_layer_params(key, emb_dim, num_head, ffn_hidden_dim):
    D, F = emb_dim, ffn_hidden_dim
    ks = jax.random.split(key, 6)
    s = 0.02
    wdt = jnp.bfloat16     # MXU operand dtype; biases / LN params stay f32
    return {
        "wq": (jax.random.normal(ks[0], (D, D), jnp.float32) * s).astype(wdt),
        "bq": jnp.zeros((1, D), jnp.float32),
        "wk": (jax.random.normal(ks[1], (D, D), jnp.float32) * s).astype(wdt),
        "bk": jnp.zeros((1, D), jnp.float32),
        "wv": (jax.random.normal(ks[2], (D, D), jnp.float32) * s).astype(wdt),
        "bv": jnp.zeros((1, D), jnp.float32),
        "wo": (jax.random.normal(ks[3], (D, D), jnp.float32) * s).astype(wdt),
        "bo": jnp.zeros((1, D), jnp.float32),
        "g1": jnp.ones((1, D), jnp.float32),
        "be1": jnp.zeros((1, D), jnp.float32),
        "w1": (jax.random.normal(ks[4], (D, F), jnp.float32) * s).astype(wdt),
        "bf1": jnp.zeros((1, F), jnp.float32),
        "w2": (jax.random.normal(ks[5], (F, D), jnp.float32) * s).astype(wdt),
        "bf2": jnp.zeros((1, D), jnp.float32),
        "g2": jnp.ones((1, D), jnp.float32),
        "be2": jnp.zeros((1, D), jnp.float32),
    }


def stack_layer_params(layer_params):
    """Stack per-layer params along a leading layer axis (done once, not per step)."""
    return {k: jnp.stack([p[k] for p in layer_params], axis=0)
            for k in layer_params[0]}


def encoder_forward(tokens, mask, emb_table, pos_enc, stacked_params, num_head):
    # TransformerEmbedding: token embedding + sinusoidal PE (+ dropout == identity).
    # Gather stays in plain JAX (glue); the whole layer stack is one Pallas call.
    B, S = tokens.shape
    x = jnp.take(emb_table, tokens, axis=0) + pos_enc[:S][None, :, :]
    return encoder_stack(x, mask, stacked_params, num_head)


if __name__ == "__main__":
    vocab_size = 100
    emb_dim = 32
    max_seq_len = 16
    num_layers = 2
    num_head = 4
    ffn_hidden_dim = 64
    B, S = 2, 8

    key = jax.random.PRNGKey(0)
    k_emb, k_tok, *k_layers = jax.random.split(key, 2 + num_layers)

    emb_table = jax.random.normal(k_emb, (vocab_size, emb_dim), jnp.float32) * 0.02
    pos_enc = sinusoidal_pos_encoding(max_seq_len, emb_dim)
    layer_params = [init_layer_params(k, emb_dim, num_head, ffn_hidden_dim)
                    for k in k_layers]
    stacked_params = stack_layer_params(layer_params)

    tokens = jax.random.randint(k_tok, (B, S), 0, vocab_size)
    # key-padding mask: 1 = attend, 0 = masked (last two keys of batch 1 masked)
    mask = jnp.ones((B, 1, S), jnp.float32)
    mask = mask.at[1, 0, 6:].set(0.0)

    out = encoder_forward(tokens, mask, emb_table, pos_enc,
                          stacked_params, num_head)
    jax.block_until_ready(out)
    assert out.shape == (B, S, emb_dim)
    assert bool(jnp.all(jnp.isfinite(out)))
    print("KERNEL_OK")
</pallas_src>

<mosaic_0001>
module attributes {stable_mosaic.version = 11 : i64} {
  func.func @encoder_stack_kernel(%arg0: i32, %arg1: memref<16x32xf32, #tpu.memory_space<vmem>>, %arg2: memref<2x1x8xf32, #tpu.memory_space<vmem>>, %arg3: memref<1x32x32xbf16, #tpu.memory_space<vmem>>, %arg4: memref<1x1x32xf32, #tpu.memory_space<vmem>>, %arg5: memref<1x32x32xbf16, #tpu.memory_space<vmem>>, %arg6: memref<1x1x32xf32, #tpu.memory_space<vmem>>, %arg7: memref<1x32x32xbf16, #tpu.memory_space<vmem>>, %arg8: memref<1x1x32xf32, #tpu.memory_space<vmem>>, %arg9: memref<1x32x32xbf16, #tpu.memory_space<vmem>>, %arg10: memref<1x1x32xf32, #tpu.memory_space<vmem>>, %arg11: memref<1x1x32xf32, #tpu.memory_space<vmem>>, %arg12: memref<1x1x32xf32, #tpu.memory_space<vmem>>, %arg13: memref<1x32x64xbf16, #tpu.memory_space<vmem>>, %arg14: memref<1x1x64xf32, #tpu.memory_space<vmem>>, %arg15: memref<1x64x32xbf16, #tpu.memory_space<vmem>>, %arg16: memref<1x1x32xf32, #tpu.memory_space<vmem>>, %arg17: memref<1x1x32xf32, #tpu.memory_space<vmem>>, %arg18: memref<1x1x32xf32, #tpu.memory_space<vmem>>, %arg19: memref<16x32xf32, #tpu.memory_space<vmem>>, %arg20: memref<16x32xf32, #tpu.memory_space<vmem>>) attributes {dimension_semantics = [#tpu.dimension_semantics<arbitrary>], iteration_bounds = array<i64: 2>, scalar_prefetch = 0 : i64, scratch_operands = 1 : i64, tpu.core_type = #tpu.core_type<tc>, window_params = [{pipeline_mode = #tpu.pipeline_mode<synchronous>, transform_indices = @transform_0, window_bounds = array<i64: 16, 32>}, {pipeline_mode = #tpu.pipeline_mode<synchronous>, transform_indices = @transform_1, window_bounds = array<i64: 2, 1, 8>}, {transform_indices = @transform_2, window_bounds = array<i64: 1, 32, 32>}, {transform_indices = @transform_3, window_bounds = array<i64: 1, 1, 32>}, {transform_indices = @transform_4, window_bounds = array<i64: 1, 32, 32>}, {transform_indices = @transform_5, window_bounds = array<i64: 1, 1, 32>}, {transform_indices = @transform_6, window_bounds = array<i64: 1, 32, 32>}, {transform_indices = @transform_7, window_bounds = array<i64: 1, 1, 32>}, {transform_indices = @transform_8, window_bounds = array<i64: 1, 32, 32>}, {transform_indices = @transform_9, window_bounds = array<i64: 1, 1, 32>}, {transform_indices = @transform_10, window_bounds = array<i64: 1, 1, 32>}, {transform_indices = @transform_11, window_bounds = array<i64: 1, 1, 32>}, {transform_indices = @transform_12, window_bounds = array<i64: 1, 32, 64>}, {transform_indices = @transform_13, window_bounds = array<i64: 1, 1, 64>}, {transform_indices = @transform_14, window_bounds = array<i64: 1, 64, 32>}, {transform_indices = @transform_15, window_bounds = array<i64: 1, 1, 32>}, {transform_indices = @transform_16, window_bounds = array<i64: 1, 1, 32>}, {transform_indices = @transform_17, window_bounds = array<i64: 1, 1, 32>}, {pipeline_mode = #tpu.pipeline_mode<synchronous>, transform_indices = @transform_18, window_bounds = array<i64: 16, 32>}]} {
    %c0_i32 = arith.constant 0 : i32
    %0 = arith.cmpi eq, %arg0, %c0_i32 : i32
    %1 = arith.extui %0 : i1 to i32
    %c0_i32_0 = arith.constant 0 : i32
    %2 = arith.cmpi ne, %1, %c0_i32_0 : i32
    scf.if %2 {
      %c0_100 = arith.constant 0 : index
      %c0_101 = arith.constant 0 : index
      %224 = vector.load %arg1[%c0_100, %c0_101] : memref<16x32xf32, #tpu.memory_space<vmem>>, vector<16x32xf32>
      %c0_102 = arith.constant 0 : index
      %c0_103 = arith.constant 0 : index
      %225 = vector.load %arg20[%c0_102, %c0_103] : memref<16x32xf32, #tpu.memory_space<vmem>>, vector<16x32xf32>
      tpu.vector_store %arg20[%c0_102, %c0_103], %224 {strides = array<i32>} : memref<16x32xf32, #tpu.memory_space<vmem>>, vector<16x32xf32>,
    } else {
    }
    %c0 = arith.constant 0 : index
    %c0_1 = arith.constant 0 : index
    %3 = vector.load %arg20[%c0, %c0_1] : memref<16x32xf32, #tpu.memory_space<vmem>>, vector<16x32xf32>
    %4 = arith.truncf %3 : vector<16x32xf32> to vector<16x32xbf16>
    %c0_2 = arith.constant 0 : index
    %c0_3 = arith.constant 0 : index
    %c0_4 = arith.constant 0 : index
    %5 = vector.load %arg3[%c0_2, %c0_3, %c0_4] : memref<1x32x32xbf16, #tpu.memory_space<vmem>>, vector<1x32x32xbf16>
    %6 = vector.shape_cast %5 : vector<1x32x32xbf16> to vector<32x32xbf16>
    %cst = arith.constant dense<0.000000e+00> : vector<16x32xf32>
    %7 = tpu.matmul %4, %6, %cst {dimension_numbers = #tpu.dot_dimension_numbers<[1], [0], [0], [1], [0, 0, 1, 1], [], []>} : vector<16x32xbf16>, vector<32x32xbf16>, vector<16x32xf32> -> vector<16x32xf32>
    %c0_5 = arith.constant 0 : index
    %c0_6 = arith.constant 0 : index
    %c0_7 = arith.constant 0 : index
    %8 = vector.load %arg4[%c0_5, %c0_6, %c0_7] : memref<1x1x32xf32, #tpu.memory_space<vmem>>, vector<1x1x32xf32>
    %9 = vector.shape_cast %8 : vector<1x1x32xf32> to vector<1x32xf32>
    %10 = vector.broadcast %9 : vector<1x32xf32> to vector<16x32xf32>
    %11 = arith.addf %7, %10 : vector<16x32xf32>
    %cst_8 = arith.constant 0.353553385 : f32
    %12 = vector.broadcast %cst_8 : f32 to vector<16x32xf32>
    %13 = arith.mulf %11, %12 : vector<16x32xf32>
    %c0_9 = arith.constant 0 : index
    %c0_10 = arith.constant 0 : index
    %c0_11 = arith.constant 0 : index
    %14 = vector.load %arg5[%c0_9, %c0_10, %c0_11] : memref<1x32x32xbf16, #tpu.memory_space<vmem>>, vector<1x32x32xbf16>
    %15 = vector.shape_cast %14 : vector<1x32x32xbf16> to vector<32x32xbf16>
    %cst_12 = arith.constant dense<0.000000e+00> : vector<16x32xf32>
    %16 = tpu.matmul %4, %15, %cst_12 {dimension_numbers = #tpu.dot_dimension_numbers<[1], [0], [0], [1], [0, 0, 1, 1], [], []>} : vector<16x32xbf16>, vector<32x32xbf16>, vector<16x32xf32> -> vector<16x32xf32>
    %c0_13 = arith.constant 0 : index
    %c0_14 = arith.constant 0 : index
    %c0_15 = arith.constant 0 : index
    %17 = vector.load %arg6[%c0_13, %c0_14, %c0_15] : memref<1x1x32xf32, #tpu.memory_space<vmem>>, vector<1x1x32xf32>
    %18 = vector.shape_cast %17 : vector<1x1x32xf32> to vector<1x32xf32>
    %19 = vector.broadcast %18 : vector<1x32xf32> to vector<16x32xf32>
    %20 = arith.addf %16, %19 : vector<16x32xf32>
    %c0_16 = arith.constant 0 : index
    %c0_17 = arith.constant 0 : index
    %c0_18 = arith.constant 0 : index
    %21 = vector.load %arg7[%c0_16, %c0_17, %c0_18] : memref<1x32x32xbf16, #tpu.memory_space<vmem>>, vector<1x32x32xbf16>
    %22 = vector.shape_cast %21 : vector<1x32x32xbf16> to vector<32x32xbf16>
    %cst_19 = arith.constant dense<0.000000e+00> : vector<16x32xf32>
    %23 = tpu.matmul %4, %22, %cst_19 {dimension_numbers = #tpu.dot_dimension_numbers<[1], [0], [0], [1], [0, 0, 1, 1], [], []>} : vector<16x32xbf16>, vector<32x32xbf16>, vector<16x32xf32> -> vector<16x32xf32>
    %c0_20 = arith.constant 0 : index
    %c0_21 = arith.constant 0 : index
    %c0_22 = arith.constant 0 : index
    %24 = vector.load %arg8[%c0_20, %c0_21, %c0_22] : memref<1x1x32xf32, #tpu.memory_space<vmem>>, vector<1x1x32xf32>
    %25 = vector.shape_cast %24 : vector<1x1x32xf32> to vector<1x32xf32>
    %26 = vector.broadcast %25 : vector<1x32xf32> to vector<16x32xf32>
    %27 = arith.addf %23, %26 : vector<16x32xf32>
    %c0_23 = arith.constant 0 : index
    %c0_24 = arith.constant 0 : index
    %c0_25 = arith.constant 0 : index
    %28 = vector.load %arg2[%c0_23, %c0_24, %c0_25] : memref<2x1x8xf32, #tpu.memory_space<vmem>>, vector<2x1x8xf32>
    %cst_26 = arith.constant 0.000000e+00 : f32
    %29 = vector.broadcast %cst_26 : f32 to vector<16x32xf32>
    %30 = vector.extract_strided_slice %13 {offsets = [0, 0], sizes = [16, 8], strides = [1, 1]} : vector<16x32xf32> to vector<16x8xf32>
    %31 = arith.truncf %30 : vector<16x8xf32> to vector<16x8xbf16>
    %32 = vector.shape_cast %31 : vector<16x8xbf16> to vector<2x8x8xbf16>
    %33 = vector.extract_strided_slice %20 {offsets = [0, 0], sizes = [16, 8], strides = [1, 1]} : vector<16x32xf32> to vector<16x8xf32>
    %34 = arith.truncf %33 : vector<16x8xf32> to vector<16x8xbf16>
    %35 = vector.shape_cast %34 : vector<16x8xbf16> to vector<2x8x8xbf16>
    %36 = vector.extract_strided_slice %27 {offsets = [0, 0], sizes = [16, 8], strides = [1, 1]} : vector<16x32xf32> to vector<16x8xf32>
    %37 = arith.truncf %36 : vector<16x8xf32> to vector<16x8xbf16>
    %38 = vector.shape_cast %37 : vector<16x8xbf16> to vector<2x8x8xbf16>
    "tpu.trace_start"() <{level = 10 : i32, message = "bqd,bkd->bqk"}> : () -> ()
    %cst_27 = arith.constant dense<0.000000e+00> : vector<2x8x8xf32>
    %39 = tpu.matmul %32, %35, %cst_27 {dimension_numbers = #tpu.dot_dimension_numbers<[2], [2], [1], [1], [0, 0, 0, 1, 1, 1], [0], [0]>} : vector<2x8x8xbf16>, vector<2x8x8xbf16>, vector<2x8x8xf32> -> vector<2x8x8xf32>
    "tpu.trace_stop"() : () -> ()
    %40 = vector.broadcast %28 : vector<2x1x8xf32> to vector<2x8x8xf32>
    %41 = arith.addf %39, %40 : vector<2x8x8xf32>
    %cst_28 = arith.constant dense<0xFF800000> : vector<2x8xf32>
    %42 = vector.multi_reduction <maximumf>, %41, %cst_28 [2] : vector<2x8x8xf32> to vector<2x8xf32>
    %43 = vector.shape_cast %42 : vector<2x8xf32> to vector<2x8x1xf32>
    %44 = vector.broadcast %43 : vector<2x8x1xf32> to vector<2x8x8xf32>
    %45 = arith.subf %41, %44 : vector<2x8x8xf32>
    %46 = math.exp %45 : vector<2x8x8xf32>
    %cst_29 = arith.constant dense<0.000000e+00> : vector<2x8xf32>
    %47 = vector.multi_reduction <add>, %46, %cst_29 [2] : vector<2x8x8xf32> to vector<2x8xf32>
    %48 = vector.shape_cast %47 : vector<2x8xf32> to vector<2x8x1xf32>
    %49 = vector.broadcast %48 : vector<2x8x1xf32> to vector<2x8x8xf32>
    %50 = arith.divf %46, %49 : vector<2x8x8xf32>
    %51 = arith.truncf %50 : vector<2x8x8xf32> to vector<2x8x8xbf16>
    "tpu.trace_start"() <{level = 10 : i32, message = "bqk,bkd->bqd"}> : () -> ()
    %cst_30 = arith.constant dense<0.000000e+00> : vector<2x8x8xf32>
    %52 = tpu.matmul %51, %38, %cst_30 {dimension_numbers = #tpu.dot_dimension_numbers<[2], [1], [1], [2], [0, 0, 0, 1, 1, 2], [0], [0]>} : vector<2x8x8xbf16>, vector<2x8x8xbf16>, vector<2x8x8xf32> -> vector<2x8x8xf32>
    "tpu.trace_stop"() : () -> ()
    %53 = vector.shape_cast %52 : vector<2x8x8xf32> to vector<16x8xf32>
    %54 = arith.truncf %53 : vector<16x8xf32> to vector<16x8xbf16>
    %c0_31 = arith.constant 0 : index
    %c0_32 = arith.constant 0 : index
    %c0_33 = arith.constant 0 : index
    %55 = vector.load %arg9[%c0_31, %c0_32, %c0_33] : memref<1x32x32xbf16, #tpu.memory_space<vmem>>, vector<1x8x32xbf16>
    %56 = vector.shape_cast %55 : vector<1x8x32xbf16> to vector<8x32xbf16>
    %cst_34 = arith.constant dense<0.000000e+00> : vector<16x32xf32>
    %57 = tpu.matmul %54, %56, %cst_34 {dimension_numbers = #tpu.dot_dimension_numbers<[1], [0], [0], [1], [0, 0, 1, 1], [], []>} : vector<16x8xbf16>, vector<8x32xbf16>, vector<16x32xf32> -> vector<16x32xf32>
    %58 = arith.addf %29, %57 : vector<16x32xf32>
    %59 = vector.extract_strided_slice %13 {offsets = [0, 8], sizes = [16, 8], strides = [1, 1]} : vector<16x32xf32> to vector<16x8xf32>
    %60 = arith.truncf %59 : vector<16x8xf32> to vector<16x8xbf16>
    %61 = vector.shape_cast %60 : vector<16x8xbf16> to vector<2x8x8xbf16>
    %62 = vector.extract_strided_slice %20 {offsets = [0, 8], sizes = [16, 8], strides = [1, 1]} : vector<16x32xf32> to vector<16x8xf32>
    %63 = arith.truncf %62 : vector<16x8xf32> to vector<16x8xbf16>
    %64 = vector.shape_cast %63 : vector<16x8xbf16> to vector<2x8x8xbf16>
    %65 = vector.extract_strided_slice %27 {offsets = [0, 8], sizes = [16, 8], strides = [1, 1]} : vector<16x32xf32> to vector<16x8xf32>
    %66 = arith.truncf %65 : vector<16x8xf32> to vector<16x8xbf16>
    %67 = vector.shape_cast %66 : vector<16x8xbf16> to vector<2x8x8xbf16>
    "tpu.trace_start"() <{level = 10 : i32, message = "bqd,bkd->bqk"}> : () -> ()
    %cst_35 = arith.constant dense<0.000000e+00> : vector<2x8x8xf32>
    %68 = tpu.matmul %61, %64, %cst_35 {dimension_numbers = #tpu.dot_dimension_numbers<[2], [2], [1], [1], [0, 0, 0, 1, 1, 1], [0], [0]>} : vector<2x8x8xbf16>, vector<2x8x8xbf16>, vector<2x8x8xf32> -> vector<2x8x8xf32>
    "tpu.trace_stop"() : () -> ()
    %69 = vector.broadcast %28 : vector<2x1x8xf32> to vector<2x8x8xf32>
    %70 = arith.addf %68, %69 : vector<2x8x8xf32>
    %cst_36 = arith.constant dense<0xFF800000> : vector<2x8xf32>
    %71 = vector.multi_reduction <maximumf>, %70, %cst_36 [2] : vector<2x8x8xf32> to vector<2x8xf32>
    %72 = vector.shape_cast %71 : vector<2x8xf32> to vector<2x8x1xf32>
    %73 = vector.broadcast %72 : vector<2x8x1xf32> to vector<2x8x8xf32>
    %74 = arith.subf %70, %73 : vector<2x8x8xf32>
    %75 = math.exp %74 : vector<2x8x8xf32>
    %cst_37 = arith.constant dense<0.000000e+00> : vector<2x8xf32>
    %76 = vector.multi_reduction <add>, %75, %cst_37 [2] : vector<2x8x8xf32> to vector<2x8xf32>
    %77 = vector.shape_cast %76 : vector<2x8xf32> to vector<2x8x1xf32>
    %78 = vector.broadcast %77 : vector<2x8x1xf32> to vector<2x8x8xf32>
    %79 = arith.divf %75, %78 : vector<2x8x8xf32>
    %80 = arith.truncf %79 : vector<2x8x8xf32> to vector<2x8x8xbf16>
    "tpu.trace_start"() <{level = 10 : i32, message = "bqk,bkd->bqd"}> : () -> ()
    %cst_38 = arith.constant dense<0.000000e+00> : vector<2x8x8xf32>
    %81 = tpu.matmul %80, %67, %cst_38 {dimension_numbers = #tpu.dot_dimension_numbers<[2], [1], [1], [2], [0, 0, 0, 1, 1, 2], [0], [0]>} : vector<2x8x8xbf16>, vector<2x8x8xbf16>, vector<2x8x8xf32> -> vector<2x8x8xf32>
    "tpu.trace_stop"() : () -> ()
    %82 = vector.shape_cast %81 : vector<2x8x8xf32> to vector<16x8xf32>
    %83 = arith.truncf %82 : vector<16x8xf32> to vector<16x8xbf16>
    %c0_39 = arith.constant 0 : index
    %c8 = arith.constant 8 : index
    %c0_40 = arith.constant 0 : index
    %84 = vector.load %arg9[%c0_39, %c8, %c0_40] : memref<1x32x32xbf16, #tpu.memory_space<vmem>>, vector<1x8x32xbf16>
    %85 = vector.shape_cast %84 : vector<1x8x32xbf16> to vector<8x32xbf16>
    %cst_41 = arith.constant dense<0.000000e+00> : vector<16x32xf32>
    %86 = tpu.matmul %83, %85, %cst_41 {dimension_numbers = #tpu.dot_dimension_numbers<[1], [0], [0], [1], [0, 0, 1, 1], [], []>} : vector<16x8xbf16>, vector<8x32xbf16>, vector<16x32xf32> -> vector<16x32xf32>
    %87 = arith.addf %58, %86 : vector<16x32xf32>
    %88 = vector.extract_strided_slice %13 {offsets = [0, 16], sizes = [16, 8], strides = [1, 1]} : vector<16x32xf32> to vector<16x8xf32>
    %89 = arith.truncf %88 : vector<16x8xf32> to vector<16x8xbf16>
    %90 = vector.shape_cast %89 : vector<16x8xbf16> to vector<2x8x8xbf16>
    %91 = vector.extract_strided_slice %20 {offsets = [0, 16], sizes = [16, 8], strides = [1, 1]} : vector<16x32xf32> to vector<16x8xf32>
    %92 = arith.truncf %91 : vector<16x8xf32> to vector<16x8xbf16>
    %93 = vector.shape_cast %92 : vector<16x8xbf16> to vector<2x8x8xbf16>
    %94 = vector.extract_strided_slice %27 {offsets = [0, 16], sizes = [16, 8], strides = [1, 1]} : vector<16x32xf32> to vector<16x8xf32>
    %95 = arith.truncf %94 : vector<16x8xf32> to vector<16x8xbf16>
    %96 = vector.shape_cast %95 : vector<16x8xbf16> to vector<2x8x8xbf16>
    "tpu.trace_start"() <{level = 10 : i32, message = "bqd,bkd->bqk"}> : () -> ()
    %cst_42 = arith.constant dense<0.000000e+00> : vector<2x8x8xf32>
    %97 = tpu.matmul %90, %93, %cst_42 {dimension_numbers = #tpu.dot_dimension_numbers<[2], [2], [1], [1], [0, 0, 0, 1, 1, 1], [0], [0]>} : vector<2x8x8xbf16>, vector<2x8x8xbf16>, vector<2x8x8xf32> -> vector<2x8x8xf32>
    "tpu.trace_stop"() : () -> ()
    %98 = vector.broadcast %28 : vector<2x1x8xf32> to vector<2x8x8xf32>
    %99 = arith.addf %97, %98 : vector<2x8x8xf32>
    %cst_43 = arith.constant dense<0xFF800000> : vector<2x8xf32>
    %100 = vector.multi_reduction <maximumf>, %99, %cst_43 [2] : vector<2x8x8xf32> to vector<2x8xf32>
    %101 = vector.shape_cast %100 : vector<2x8xf32> to vector<2x8x1xf32>
    %102 = vector.broadcast %101 : vector<2x8x1xf32> to vector<2x8x8xf32>
    %103 = arith.subf %99, %102 : vector<2x8x8xf32>
    %104 = math.exp %103 : vector<2x8x8xf32>
    %cst_44 = arith.constant dense<0.000000e+00> : vector<2x8xf32>
    %105 = vector.multi_reduction <add>, %104, %cst_44 [2] : vector<2x8x8xf32> to vector<2x8xf32>
    %106 = vector.shape_cast %105 : vector<2x8xf32> to vector<2x8x1xf32>
    %107 = vector.broadcast %106 : vector<2x8x1xf32> to vector<2x8x8xf32>
    %108 = arith.divf %104, %107 : vector<2x8x8xf32>
    %109 = arith.truncf %108 : vector<2x8x8xf32> to vector<2x8x8xbf16>
    "tpu.trace_start"() <{level = 10 : i32, message = "bqk,bkd->bqd"}> : () -> ()
    %cst_45 = arith.constant dense<0.000000e+00> : vector<2x8x8xf32>
    %110 = tpu.matmul %109, %96, %cst_45 {dimension_numbers = #tpu.dot_dimension_numbers<[2], [1], [1], [2], [0, 0, 0, 1, 1, 2], [0], [0]>} : vector<2x8x8xbf16>, vector<2x8x8xbf16>, vector<2x8x8xf32> -> vector<2x8x8xf32>
    "tpu.trace_stop"() : () -> ()
    %111 = vector.shape_cast %110 : vector<2x8x8xf32> to vector<16x8xf32>
    %112 = arith.truncf %111 : vector<16x8xf32> to vector<16x8xbf16>
    %c0_46 = arith.constant 0 : index
    %c16 = arith.constant 16 : index
    %c0_47 = arith.constant 0 : index
    %113 = vector.load %arg9[%c0_46, %c16, %c0_47] : memref<1x32x32xbf16, #tpu.memory_space<vmem>>, vector<1x8x32xbf16>
    %114 = vector.shape_cast %113 : vector<1x8x32xbf16> to vector<8x32xbf16>
    %cst_48 = arith.constant dense<0.000000e+00> : vector<16x32xf32>
    %115 = tpu.matmul %112, %114, %cst_48 {dimension_numbers = #tpu.dot_dimension_numbers<[1], [0], [0], [1], [0, 0, 1, 1], [], []>} : vector<16x8xbf16>, vector<8x32xbf16>, vector<16x32xf32> -> vector<16x32xf32>
    %116 = arith.addf %87, %115 : vector<16x32xf32>
    %117 = vector.extract_strided_slice %13 {offsets = [0, 24], sizes = [16, 8], strides = [1, 1]} : vector<16x32xf32> to vector<16x8xf32>
    %118 = arith.truncf %117 : vector<16x8xf32> to vector<16x8xbf16>
    %119 = vector.shape_cast %118 : vector<16x8xbf16> to vector<2x8x8xbf16>
    %120 = vector.extract_strided_slice %20 {offsets = [0, 24], sizes = [16, 8], strides = [1, 1]} : vector<16x32xf32> to vector<16x8xf32>
    %121 = arith.truncf %120 : vector<16x8xf32> to vector<16x8xbf16>
    %122 = vector.shape_cast %121 : vector<16x8xbf16> to vector<2x8x8xbf16>
    %123 = vector.extract_strided_slice %27 {offsets = [0, 24], sizes = [16, 8], strides = [1, 1]} : vector<16x32xf32> to vector<16x8xf32>
    %124 = arith.truncf %123 : vector<16x8xf32> to vector<16x8xbf16>
    %125 = vector.shape_cast %124 : vector<16x8xbf16> to vector<2x8x8xbf16>
    "tpu.trace_start"() <{level = 10 : i32, message = "bqd,bkd->bqk"}> : () -> ()
    %cst_49 = arith.constant dense<0.000000e+00> : vector<2x8x8xf32>
    %126 = tpu.matmul %119, %122, %cst_49 {dimension_numbers = #tpu.dot_dimension_numbers<[2], [2], [1], [1], [0, 0, 0, 1, 1, 1], [0], [0]>} : vector<2x8x8xbf16>, vector<2x8x8xbf16>, vector<2x8x8xf32> -> vector<2x8x8xf32>
    "tpu.trace_stop"() : () -> ()
    %127 = vector.broadcast %28 : vector<2x1x8xf32> to vector<2x8x8xf32>
    %128 = arith.addf %126, %127 : vector<2x8x8xf32>
    %cst_50 = arith.constant dense<0xFF800000> : vector<2x8xf32>
    %129 = vector.multi_reduction <maximumf>, %128, %cst_50 [2] : vector<2x8x8xf32> to vector<2x8xf32>
    %130 = vector.shape_cast %129 : vector<2x8xf32> to vector<2x8x1xf32>
    %131 = vector.broadcast %130 : vector<2x8x1xf32> to vector<2x8x8xf32>
    %132 = arith.subf %128, %131 : vector<2x8x8xf32>
    %133 = math.exp %132 : vector<2x8x8xf32>
    %cst_51 = arith.constant dense<0.000000e+00> : vector<2x8xf32>
    %134 = vector.multi_reduction <add>, %133, %cst_51 [2] : vector<2x8x8xf32> to vector<2x8xf32>
    %135 = vector.shape_cast %134 : vector<2x8xf32> to vector<2x8x1xf32>
    %136 = vector.broadcast %135 : vector<2x8x1xf32> to vector<2x8x8xf32>
    %137 = arith.divf %133, %136 : vector<2x8x8xf32>
    %138 = arith.truncf %137 : vector<2x8x8xf32> to vector<2x8x8xbf16>
    "tpu.trace_start"() <{level = 10 : i32, message = "bqk,bkd->bqd"}> : () -> ()
    %cst_52 = arith.constant dense<0.000000e+00> : vector<2x8x8xf32>
    %139 = tpu.matmul %138, %125, %cst_52 {dimension_numbers = #tpu.dot_dimension_numbers<[2], [1], [1], [2], [0, 0, 0, 1, 1, 2], [0], [0]>} : vector<2x8x8xbf16>, vector<2x8x8xbf16>, vector<2x8x8xf32> -> vector<2x8x8xf32>
    "tpu.trace_stop"() : () -> ()
    %140 = vector.shape_cast %139 : vector<2x8x8xf32> to vector<16x8xf32>
    %141 = arith.truncf %140 : vector<16x8xf32> to vector<16x8xbf16>
    %c0_53 = arith.constant 0 : index
    %c24 = arith.constant 24 : index
    %c0_54 = arith.constant 0 : index
    %142 = vector.load %arg9[%c0_53, %c24, %c0_54] : memref<1x32x32xbf16, #tpu.memory_space<vmem>>, vector<1x8x32xbf16>
    %143 = vector.shape_cast %142 : vector<1x8x32xbf16> to vector<8x32xbf16>
    %cst_55 = arith.constant dense<0.000000e+00> : vector<16x32xf32>
    %144 = tpu.matmul %141, %143, %cst_55 {dimension_numbers = #tpu.dot_dimension_numbers<[1], [0], [0], [1], [0, 0, 1, 1], [], []>} : vector<16x8xbf16>, vector<8x32xbf16>, vector<16x32xf32> -> vector<16x32xf32>
    %145 = arith.addf %116, %144 : vector<16x32xf32>
    %c0_56 = arith.constant 0 : index
    %c0_57 = arith.constant 0 : index
    %c0_58 = arith.constant 0 : index
    %146 = vector.load %arg10[%c0_56, %c0_57, %c0_58] : memref<1x1x32xf32, #tpu.memory_space<vmem>>, vector<1x1x32xf32>
    %147 = vector.shape_cast %146 : vector<1x1x32xf32> to vector<1x32xf32>
    %148 = vector.broadcast %147 : vector<1x32xf32> to vector<16x32xf32>
    %149 = arith.addf %145, %148 : vector<16x32xf32>
    %150 = arith.addf %149, %3 : vector<16x32xf32>
    %cst_59 = arith.constant dense<0.000000e+00> : vector<16xf32>
    %151 = vector.multi_reduction <add>, %150, %cst_59 [1] : vector<16x32xf32> to vector<16xf32>
    %152 = vector.shape_cast %151 : vector<16xf32> to vector<16x1xf32>
    %cst_60 = arith.constant 3.200000e+01 : f32
    %153 = vector.broadcast %cst_60 : f32 to vector<16x1xf32>
    %154 = arith.divf %152, %153 : vector<16x1xf32>
    %155 = vector.broadcast %154 : vector<16x1xf32> to vector<16x32xf32>
    %156 = arith.subf %150, %155 : vector<16x32xf32>
    %157 = arith.mulf %156, %156 : vector<16x32xf32>
    %cst_61 = arith.constant dense<0.000000e+00> : vector<16xf32>
    %158 = vector.multi_reduction <add>, %157, %cst_61 [1] : vector<16x32xf32> to vector<16xf32>
    %159 = vector.shape_cast %158 : vector<16xf32> to vector<16x1xf32>
    %cst_62 = arith.constant 3.200000e+01 : f32
    %160 = vector.broadcast %cst_62 : f32 to vector<16x1xf32>
    %161 = arith.divf %159, %160 : vector<16x1xf32>
    %162 = vector.broadcast %154 : vector<16x1xf32> to vector<16x32xf32>
    %163 = arith.subf %150, %162 : vector<16x32xf32>
    %cst_63 = arith.constant 9.99999974E-6 : f32
    %164 = vector.broadcast %cst_63 : f32 to vector<16x1xf32>
    %165 = arith.addf %161, %164 : vector<16x1xf32>
    %166 = math.rsqrt %165 : vector<16x1xf32>
    %167 = vector.broadcast %166 : vector<16x1xf32> to vector<16x32xf32>
    %168 = arith.mulf %163, %167 : vector<16x32xf32>
    %c0_64 = arith.constant 0 : index
    %c0_65 = arith.constant 0 : index
    %c0_66 = arith.constant 0 : index
    %169 = vector.load %arg11[%c0_64, %c0_65, %c0_66] : memref<1x1x32xf32, #tpu.memory_space<vmem>>, vector<1x1x32xf32>
    %170 = vector.shape_cast %169 : vector<1x1x32xf32> to vector<1x32xf32>
    %171 = vector.broadcast %170 : vector<1x32xf32> to vector<16x32xf32>
    %172 = arith.mulf %168, %171 : vector<16x32xf32>
    %c0_67 = arith.constant 0 : index
    %c0_68 = arith.constant 0 : index
    %c0_69 = arith.constant 0 : index
    %173 = vector.load %arg12[%c0_67, %c0_68, %c0_69] : memref<1x1x32xf32, #tpu.memory_space<vmem>>, vector<1x1x32xf32>
    %174 = vector.shape_cast %173 : vector<1x1x32xf32> to vector<1x32xf32>
    %175 = vector.broadcast %174 : vector<1x32xf32> to vector<16x32xf32>
    %176 = arith.addf %172, %175 : vector<16x32xf32>
    %177 = arith.truncf %176 : vector<16x32xf32> to vector<16x32xbf16>
    %c0_70 = arith.constant 0 : index
    %c0_71 = arith.constant 0 : index
    %c0_72 = arith.constant 0 : index
    %178 = vector.load %arg13[%c0_70, %c0_71, %c0_72] : memref<1x32x64xbf16, #tpu.memory_space<vmem>>, vector<1x32x64xbf16>
    %179 = vector.shape_cast %178 : vector<1x32x64xbf16> to vector<32x64xbf16>
    %cst_73 = arith.constant dense<0.000000e+00> : vector<16x64xf32>
    %180 = tpu.matmul %177, %179, %cst_73 {dimension_numbers = #tpu.dot_dimension_numbers<[1], [0], [0], [1], [0, 0, 1, 1], [], []>} : vector<16x32xbf16>, vector<32x64xbf16>, vector<16x64xf32> -> vector<16x64xf32>
    %c0_74 = arith.constant 0 : index
    %c0_75 = arith.constant 0 : index
    %c0_76 = arith.constant 0 : index
    %181 = vector.load %arg14[%c0_74, %c0_75, %c0_76] : memref<1x1x64xf32, #tpu.memory_space<vmem>>, vector<1x1x64xf32>
    %182 = vector.shape_cast %181 : vector<1x1x64xf32> to vector<1x64xf32>
    %183 = vector.broadcast %182 : vector<1x64xf32> to vector<16x64xf32>
    %184 = arith.addf %180, %183 : vector<16x64xf32>
    %cst_77 = arith.constant 0.000000e+00 : f32
    %185 = vector.broadcast %cst_77 : f32 to vector<16x64xf32>
    %186 = arith.maximumf %184, %185 : vector<16x64xf32>
    %187 = arith.truncf %186 : vector<16x64xf32> to vector<16x64xbf16>
    %c0_78 = arith.constant 0 : index
    %c0_79 = arith.constant 0 : index
    %c0_80 = arith.constant 0 : index
    %188 = vector.load %arg15[%c0_78, %c0_79, %c0_80] : memref<1x64x32xbf16, #tpu.memory_space<vmem>>, vector<1x64x32xbf16>
    %189 = vector.shape_cast %188 : vector<1x64x32xbf16> to vector<64x32xbf16>
    %cst_81 = arith.constant dense<0.000000e+00> : vector<16x32xf32>
    %190 = tpu.matmul %187, %189, %cst_81 {dimension_numbers = #tpu.dot_dimension_numbers<[1], [0], [0], [1], [0, 0, 1, 1], [], []>} : vector<16x64xbf16>, vector<64x32xbf16>, vector<16x32xf32> -> vector<16x32xf32>
    %c0_82 = arith.constant 0 : index
    %c0_83 = arith.constant 0 : index
    %c0_84 = arith.constant 0 : index
    %191 = vector.load %arg16[%c0_82, %c0_83, %c0_84] : memref<1x1x32xf32, #tpu.memory_space<vmem>>, vector<1x1x32xf32>
    %192 = vector.shape_cast %191 : vector<1x1x32xf32> to vector<1x32xf32>
    %193 = vector.broadcast %192 : vector<1x32xf32> to vector<16x32xf32>
    %194 = arith.addf %190, %193 : vector<16x32xf32>
    %195 = arith.addf %194, %176 : vector<16x32xf32>
    %cst_85 = arith.constant dense<0.000000e+00> : vector<16xf32>
    %196 = vector.multi_reduction <add>, %195, %cst_85 [1] : vector<16x32xf32> to vector<16xf32>
    %197 = vector.shape_cast %196 : vector<16xf32> to vector<16x1xf32>
    %cst_86 = arith.constant 3.200000e+01 : f32
    %198 = vector.broadcast %cst_86 : f32 to vector<16x1xf32>
    %199 = arith.divf %197, %198 : vector<16x1xf32>
    %200 = vector.broadcast %199 : vector<16x1xf32> to vector<16x32xf32>
    %201 = arith.subf %195, %200 : vector<16x32xf32>
    %202 = arith.mulf %201, %201 : vector<16x32xf32>
    %cst_87 = arith.constant dense<0.000000e+00> : vector<16xf32>
    %203 = vector.multi_reduction <add>, %202, %cst_87 [1] : vector<16x32xf32> to vector<16xf32>
    %204 = vector.shape_cast %203 : vector<16xf32> to vector<16x1xf32>
    %cst_88 = arith.constant 3.200000e+01 : f32
    %205 = vector.broadcast %cst_88 : f32 to vector<16x1xf32>
    %206 = arith.divf %204, %205 : vector<16x1xf32>
    %207 = vector.broadcast %199 : vector<16x1xf32> to vector<16x32xf32>
    %208 = arith.subf %195, %207 : vector<16x32xf32>
    %cst_89 = arith.constant 9.99999974E-6 : f32
    %209 = vector.broadcast %cst_89 : f32 to vector<16x1xf32>
    %210 = arith.addf %206, %209 : vector<16x1xf32>
    %211 = math.rsqrt %210 : vector<16x1xf32>
    %212 = vector.broadcast %211 : vector<16x1xf32> to vector<16x32xf32>
    %213 = arith.mulf %208, %212 : vector<16x32xf32>
    %c0_90 = arith.constant 0 : index
    %c0_91 = arith.constant 0 : index
    %c0_92 = arith.constant 0 : index
    %214 = vector.load %arg17[%c0_90, %c0_91, %c0_92] : memref<1x1x32xf32, #tpu.memory_space<vmem>>, vector<1x1x32xf32>
    %215 = vector.shape_cast %214 : vector<1x1x32xf32> to vector<1x32xf32>
    %216 = vector.broadcast %215 : vector<1x32xf32> to vector<16x32xf32>
    %217 = arith.mulf %213, %216 : vector<16x32xf32>
    %c0_93 = arith.constant 0 : index
    %c0_94 = arith.constant 0 : index
    %c0_95 = arith.constant 0 : index
    %218 = vector.load %arg18[%c0_93, %c0_94, %c0_95] : memref<1x1x32xf32, #tpu.memory_space<vmem>>, vector<1x1x32xf32>
    %219 = vector.shape_cast %218 : vector<1x1x32xf32> to vector<1x32xf32>
    %220 = vector.broadcast %219 : vector<1x32xf32> to vector<16x32xf32>
    %221 = arith.addf %217, %220 : vector<16x32xf32>
    %c0_96 = arith.constant 0 : index
    %c0_97 = arith.constant 0 : index
    %222 = vector.load %arg20[%c0_96, %c0_97] : memref<16x32xf32, #tpu.memory_space<vmem>>, vector<16x32xf32>
    tpu.vector_store %arg20[%c0_96, %c0_97], %221 {strides = array<i32>} : memref<16x32xf32, #tpu.memory_space<vmem>>, vector<16x32xf32>,
    %c0_98 = arith.constant 0 : index
    %c0_99 = arith.constant 0 : index
    %223 = vector.load %arg19[%c0_98, %c0_99] : memref<16x32xf32, #tpu.memory_space<vmem>>, vector<16x32xf32>
    tpu.vector_store %arg19[%c0_98, %c0_99], %221 {strides = array<i32>} : memref<16x32xf32, #tpu.memory_space<vmem>>, vector<16x32xf32>,
    return
  }
  func.func @transform_0(%arg0: i32) -> (i32, i32) {
    %c0_i32 = arith.constant 0 : i32
    %c0_i32_0 = arith.constant 0 : i32
    %c0_i32_1 = arith.constant 0 : i32
    return %c0_i32, %c0_i32_0 : i32, i32
  }
  func.func @transform_1(%arg0: i32) -> (i32, i32, i32) {
    %c0_i32 = arith.constant 0 : i32
    %c0_i32_0 = arith.constant 0 : i32
    %c0_i32_1 = arith.constant 0 : i32
    %c0_i32_2 = arith.constant 0 : i32
    return %c0_i32, %c0_i32_0, %c0_i32_1 : i32, i32, i32
  }
  func.func @transform_2(%arg0: i32) -> (i32, i32, i32) {
    %c0_i32 = arith.constant 0 : i32
    %c0_i32_0 = arith.constant 0 : i32
    %c0_i32_1 = arith.constant 0 : i32
    return %arg0, %c0_i32, %c0_i32_0 : i32, i32, i32
  }
  func.func @transform_3(%arg0: i32) -> (i32, i32, i32) {
    %c0_i32 = arith.constant 0 : i32
    %c0_i32_0 = arith.constant 0 : i32
    %c0_i32_1 = arith.constant 0 : i32
    return %arg0, %c0_i32, %c0_i32_0 : i32, i32, i32
  }
  func.func @transform_4(%arg0: i32) -> (i32, i32, i32) {
    %c0_i32 = arith.constant 0 : i32
    %c0_i32_0 = arith.constant 0 : i32
    %c0_i32_1 = arith.constant 0 : i32
    return %arg0, %c0_i32, %c0_i32_0 : i32, i32, i32
  }
  func.func @transform_5(%arg0: i32) -> (i32, i32, i32) {
    %c0_i32 = arith.constant 0 : i32
    %c0_i32_0 = arith.constant 0 : i32
    %c0_i32_1 = arith.constant 0 : i32
    return %arg0, %c0_i32, %c0_i32_0 : i32, i32, i32
  }
  func.func @transform_6(%arg0: i32) -> (i32, i32, i32) {
    %c0_i32 = arith.constant 0 : i32
    %c0_i32_0 = arith.constant 0 : i32
    %c0_i32_1 = arith.constant 0 : i32
    return %arg0, %c0_i32, %c0_i32_0 : i32, i32, i32
  }
  func.func @transform_7(%arg0: i32) -> (i32, i32, i32) {
    %c0_i32 = arith.constant 0 : i32
    %c0_i32_0 = arith.constant 0 : i32
    %c0_i32_1 = arith.constant 0 : i32
    return %arg0, %c0_i32, %c0_i32_0 : i32, i32, i32
  }
  func.func @transform_8(%arg0: i32) -> (i32, i32, i32) {
    %c0_i32 = arith.constant 0 : i32
    %c0_i32_0 = arith.constant 0 : i32
    %c0_i32_1 = arith.constant 0 : i32
    return %arg0, %c0_i32, %c0_i32_0 : i32, i32, i32
  }
  func.func @transform_9(%arg0: i32) -> (i32, i32, i32) {
    %c0_i32 = arith.constant 0 : i32
    %c0_i32_0 = arith.constant 0 : i32
    %c0_i32_1 = arith.constant 0 : i32
    return %arg0, %c0_i32, %c0_i32_0 : i32, i32, i32
  }
  func.func @transform_10(%arg0: i32) -> (i32, i32, i32) {
    %c0_i32 = arith.constant 0 : i32
    %c0_i32_0 = arith.constant 0 : i32
    %c0_i32_1 = arith.constant 0 : i32
    return %arg0, %c0_i32, %c0_i32_0 : i32, i32, i32
  }
  func.func @transform_11(%arg0: i32) -> (i32, i32, i32) {
    %c0_i32 = arith.constant 0 : i32
    %c0_i32_0 = arith.constant 0 : i32
    %c0_i32_1 = arith.constant 0 : i32
    return %arg0, %c0_i32, %c0_i32_0 : i32, i32, i32
  }
  func.func @transform_12(%arg0: i32) -> (i32, i32, i32) {
    %c0_i32 = arith.constant 0 : i32
    %c0_i32_0 = arith.constant 0 : i32
    %c0_i32_1 = arith.constant 0 : i32
    return %arg0, %c0_i32, %c0_i32_0 : i32, i32, i32
  }
  func.func @transform_13(%arg0: i32) -> (i32, i32, i32) {
    %c0_i32 = arith.constant 0 : i32
    %c0_i32_0 = arith.constant 0 : i32
    %c0_i32_1 = arith.constant 0 : i32
    return %arg0, %c0_i32, %c0_i32_0 : i32, i32, i32
  }
  func.func @transform_14(%arg0: i32) -> (i32, i32, i32) {
    %c0_i32 = arith.constant 0 : i32
    %c0_i32_0 = arith.constant 0 : i32
    %c0_i32_1 = arith.constant 0 : i32
    return %arg0, %c0_i32, %c0_i32_0 : i32, i32, i32
  }
  func.func @transform_15(%arg0: i32) -> (i32, i32, i32) {
    %c0_i32 = arith.constant 0 : i32
    %c0_i32_0 = arith.constant 0 : i32
    %c0_i32_1 = arith.constant 0 : i32
    return %arg0, %c0_i32, %c0_i32_0 : i32, i32, i32
  }
  func.func @transform_16(%arg0: i32) -> (i32, i32, i32) {
    %c0_i32 = arith.constant 0 : i32
    %c0_i32_0 = arith.constant 0 : i32
    %c0_i32_1 = arith.constant 0 : i32
    return %arg0, %c0_i32, %c0_i32_0 : i32, i32, i32
  }
  func.func @transform_17(%arg0: i32) -> (i32, i32, i32) {
    %c0_i32 = arith.constant 0 : i32
    %c0_i32_0 = arith.constant 0 : i32
    %c0_i32_1 = arith.constant 0 : i32
    return %arg0, %c0_i32, %c0_i32_0 : i32, i32, i32
  }
  func.func @transform_18(%arg0: i32) -> (i32, i32) {
    %c0_i32 = arith.constant 0 : i32
    %c0_i32_0 = arith.constant 0 : i32
    %c0_i32_1 = arith.constant 0 : i32
    return %c0_i32, %c0_i32_0 : i32, i32
  }
}

</mosaic_0001>

<bundles_post_ra>
// kernel: tpu_custom_call.1
= control target key start
LH: loop header
LB: loop body
LE: loop exit
PB: predicated region body
PF: predicated region fallthrough
CT: control target
= control target key end

     0   :  { %s4011_s0 = inlined_call_operand.hbm [shape: f32[16,32], index: 0, kind: input, shape index: {}]   ;;  %s4012_s1 = inlined_call_operand.hbm [shape: f32[2,1,8], index: 1, kind: input, shape index: {}]   ;;  %s4013_s2 = inlined_call_operand.vmem [shape: bf16[2,32,32], index: 2, kind: input, shape index: {}]   ;;  %s4014_s3 = inlined_call_operand.vmem [shape: f32[2,1,32], index: 3, kind: input, shape index: {}]   ;;  %s4015_s4 = inlined_call_operand.vmem [shape: bf16[2,32,32], index: 4, kind: input, shape index: {}]   ;;  %s4016_s5 = inlined_call_operand.vmem [shape: f32[2,1,32], index: 5, kind: input, shape index: {}]   ;;  %s4017_s6 = inlined_call_operand.vmem [shape: bf16[2,32,32], index: 6, kind: input, shape index: {}]   ;;  %s4018_s7 = inlined_call_operand.vmem [shape: f32[2,1,32], index: 7, kind: input, shape index: {}]   ;;  %s4019_s8 = inlined_call_operand.hbm [shape: bf16[2,32,32], index: 8, kind: input, shape index: {}]   ;;  %s4020_s9 = inlined_call_operand.vmem [shape: f32[2,1,32], index: 9, kind: input, shape index: {}]   ;;  %s4021_s10 = inlined_call_operand.vmem [shape: f32[2,1,32], index: 10, kind: input, shape index: {}]   ;;  %s4022_s11 = inlined_call_operand.vmem [shape: f32[2,1,32], index: 11, kind: input, shape index: {}]   ;;  %s4023_s12 = inlined_call_operand.hbm [shape: bf16[2,32,64], index: 12, kind: input, shape index: {}]   ;;  %s4024_s13 = inlined_call_operand.vmem [shape: f32[2,1,64], index: 13, kind: input, shape index: {}]   ;;  %s4025_s14 = inlined_call_operand.vmem [shape: bf16[2,64,32], index: 14, kind: input, shape index: {}]   ;;  %s4026_s15 = inlined_call_operand.vmem [shape: f32[2,1,32], index: 15, kind: input, shape index: {}]   ;;  %s4027_s16 = inlined_call_operand.vmem [shape: f32[2,1,32], index: 16, kind: input, shape index: {}]   ;;  %s4028_s17 = inlined_call_operand.vmem [shape: f32[2,1,32], index: 17, kind: input, shape index: {}]   ;;  %s4029_s18 = inlined_call_operand.hbm [shape: f32[16,32], index: 18, kind: output, shape index: {}]  }
   0x1   :  { %4039 = sst [smem:[#allocation19_spill]] %s4011_s0 }
   0x2   :  { %4040 = sst [smem:[#allocation20_spill]] %s4012_s1 }
   0x3   :  { %4041 = sst [smem:[#allocation21_spill]] %s4013_s2 }
   0x4   :  { %4042 = sst [smem:[#allocation22_spill]] %s4015_s4 }
   0x5   :  { %4043 = sst [smem:[#allocation23_spill]] %s4017_s6 }
   0x6   :  { %4044 = sst [smem:[#allocation24_spill]] %s4019_s8 }
   0x7   :  { %4045 = sst [smem:[#allocation25_spill]] %s4020_s9 }
   0x8   :  { %4046 = sst [smem:[#allocation26_spill]] %s4021_s10 }
   0x9   :  { %4047 = sst [smem:[#allocation27_spill]] %s4022_s11 }
   0xa   :  { %4048 = sst [smem:[#allocation28_spill]] %s4023_s12 }
   0xb   :  { %4049 = sst [smem:[#allocation29_spill]] %s4024_s13 }
   0xc   :  { %4050 = sst [smem:[#allocation30_spill]] %s4025_s14 }
   0xd   :  { %4051 = sst [smem:[#allocation31_spill]] %s4026_s15 }
   0xe   :  { %4052 = sst [smem:[#allocation32_spill]] %s4027_s16 }
   0xf   :  { %4053 = sst [smem:[#allocation33_spill]] %s4028_s17 }
  0x10   :  { %4054 = sst [smem:[#allocation34_spill]] %s4029_s18 }
  0x11   :  { %23 = vsyncpa [#allocation4], 0 }
  0x12   :  { %24 = vsyncpa [#allocation7], 0 }
  0x13   :  { %25 = vsyncpa [#allocation5], 0  ;;  %s3423_s27 = smov 0   ;;  %s3425_s28 = smov 0  }
  0x14   :  { %s3427_s29 = smov 0   ;;  %s3429_s30 = smov 0  }
  0x15 LB: > { %4055 = sst [smem:[#allocation15_spill]] %s3300_s28  ;;  %s3442_s0 = sadd.s32 4294967295, %s3308_s30   ;;  %s3308_s30 = sphi %s3429_s30, %s4102_s30   ;;  %s3304_s29 = sphi %s3427_s29, %s4105_s29   ;;  %s3300_s28 = sphi %s3425_s28, %s4104_s28   ;;  %s3296_s27 = sphi %s3423_s27, %s4103_s27  }
  0x16   : > { %4056 = sst [smem:[#allocation16_spill]] %s3304_s29  ;;  %s3445_s19 = sadd.s32 1, %s3308_s30  }
  0x17   : > { %4057 = sst [smem:[#allocation17_spill]] %s3445_s19  ;;  %s233_s1 = ssub.s32 %s3308_s30, %s3445_s19 }
  0x18   : > { %s236_s20 = sadd.s32 1, %s3304_s29  ;;  %p234_p0 = scmp.eq.s32.totalorder %s233_s1, 0 }
  0x19   : > { %p243_p1 = scmp.ne.s32.totalorder %s3304_s29, %s3300_s28  ;;  %p244_p2 = scmp.eq.s32.totalorder %s3308_s30, 0 }
  0x1a   : > { %p249_p3 = scmp.ne.s32.totalorder %s3300_s28, %s3296_s27  ;;  %p4030_p5 = scmp.eq.s32.totalorder %s3442_s0, 0 }
  0x1b   : > { %s3455_s21 = scalar_select %p234_p0, %s3304_s29, %s236_s20  }
  0x1c   : > { %p3457_p4 = por %p244_p2, %p243_p1  ;;  %p2677_p6 = scmp.ge.s32.totalorder %s3308_s30, 1 }
  0x1d   : > { %4058 = sst [smem:[#allocation18_spill]] %s3455_s21  ;;  %p515_p7 = scmp.lt.s32.totalorder %s3308_s30, 3 }
  0x1e   : > { %p3466_p8 = por %p4030_p5, %p249_p3  ;;  %s3310_s24 = smov [#allocation3]  }
  0x1f   : > { %p3471_p10 = pnand %p2677_p6, %p515_p7  ;;  %s527_s25 = sshll.u32 %s3310_s24, 4  ;;  %s528_s25 = int_to_ptr.vmem [resolvable:$true] %s527_s25 }
  0x20   : > { %s4060_s2 = scalar_select %p3466_p8, 1, 0 }
  0x21   : > { %s4061_s23 = scalar_select %p3471_p10, 1, 0 }
  0x22   : > { %p3009_p11 = pneg %p3471_p10  ;;  %p3025_p13 = scmp.lt.s32.totalorder %s3308_s30, 2 }
  0x23   : > { %s596_s27 = sand.u32 1, %s3308_s30   ;;  %s598_s1 = sand.u32 1, %s3304_s29  }
  0x24   : > { %p3479_p12 = pnand %p3009_p11, %p4030_p5  ;;  %p3488_p0 = pnand %p3025_p13, %p3457_p4 }
  0x25   : > { %s3141_s24 = scalar_lea.vmem %s528_s25, 256  ;;  %p3149_p7 = scmp.lt.s32.totalorder %s528_s25, %s528_s25 }
  0x26   : > { %p4034_p1 = pneg %p3479_p12  ;;  %p3142_p2 = scmp.ne.s32.totalorder %s528_s25, %s3141_s24 }
  0x27   : > { %p3150_p11 = scmp.lt.s32.totalorder %s3141_s24, %s3141_s24 }
  0x28   : > { %p3144_p3 = pnand %p3142_p2, %p4034_p1 }
  0x29   : > { %p3151_p9 = por %p3150_p11, %p3149_p7 }
  0x2a   : > { %p3145_p6 = pneg %p3144_p3 }
  0x2c   : > { %p3152_p5 = pnand %p3151_p9, %p3145_p6 }
  0x2e   : > { %3155 = shalt.err (!%p3152_p5)
}
  0x2f   : > { %s3311_s21 = smov 128   ;;  %s3312_s22 = smov 8  }
  0x30   : > { %s4064_s18 = sld [smem:[#allocation19_spill]]  ;;  %s3502_s17 = sshll.u32 %s598_s1, 4 }
  0x31   : > { %s2760_s16 = sshll.u32 %s3308_s30, 8  ;;  %s4065_s8 = sld [smem:[#allocation24_spill]] }
  0x32   : > { %s600_s13 = scalar_lea.vmem [#allocation8], %s3502_s17  ;;  %s3515_s10 = scalar_lea.sflag [#allocation4], %s596_s27 }
  0x33   : > { %s607_s11 = sshll.u32 %s600_s13, 4  ;;  %p3158_p5 = pneg %p3488_p0  ;;  %s3513_s11 = int_to_ptr.vmem [resolvable:$true] %s607_s11 }
  0x36   : > { %3012 = dma.hbm_to_vmem [thread:$0]  (!%p3479_p12), %s4064_s18, 256, %s528_s25, [#allocation4], %s3311_s21, %s3311_s21, %s3312_s22  }
  0x37   : > { %s3510_s14 = scalar_lea.hbm %s4065_s8, %s2760_s16  ;;  %s3161_s19 = scalar_lea.hbm %s4065_s8, 512 }
  0x38   : > { %s3156_s18 = scalar_lea.hbm %s3510_s14, 256  ;;  %p3162_p2 = scmp.lt.s32.totalorder %s3510_s14, %s4065_s8 }
  0x39   : > { %p3157_p4 = scmp.ne.s32.totalorder %s3510_s14, %s3156_s18  ;;  %p3163_p3 = scmp.lt.s32.totalorder %s3161_s19, %s3156_s18 }
  0x3b   : > { %p3159_p9 = pnand %p3158_p5, %p3157_p4  ;;  %p3164_p6 = por %p3163_p3, %p3162_p2 }
  0x3d   : > { %p3160_p13 = pneg %p3159_p9 }
  0x3f   : > { %p3165_p7 = pnand %p3164_p6, %p3160_p13 }
  0x41   : > { %3168 = shalt.err (!%p3165_p7)
}
  0x42   : > { %s3169_s13 = scalar_lea.vmem %s3513_s11, 256  ;;  %s3313_s27 = smov [#allocation8]  }
  0x43   : > { %p3170_p11 = scmp.ne.s32.totalorder %s3513_s11, %s3169_s13  ;;  %s3174_s1 = sshll.u32 %s3313_s27, 4  ;;  %s3175_s1 = int_to_ptr.vmem [resolvable:$false] %s3174_s1 }
  0x44   : > { %s3176_s22 = scalar_lea.vmem %s3175_s1, 512  ;;  %p3177_p1 = scmp.lt.s32.totalorder %s3513_s11, %s3175_s1 }
  0x45   : > { %p3172_p4 = pnand %p3170_p11, %p3158_p5  ;;  %p3178_p8 = scmp.lt.s32.totalorder %s3176_s22, %s3169_s13 }
  0x47   : > { %p3173_p9 = pneg %p3172_p4  ;;  %p3179_p10 = por %p3178_p8, %p3177_p1 }
  0x49   : > { %p3180_p2 = pnand %p3179_p10, %p3173_p9 }
  0x4b   : > { %3183 = shalt.err (!%p3180_p2)
}
  0x4c   : > { %s4037_s24 = smov 64   ;;  %s3315_s18 = smov 4  }
  0x4d   : > { %3019 = dma.hbm_to_vmem [thread:$0]  (!%p3488_p0), %s3510_s14, 256, %s3513_s11, %s3515_s10, %s4037_s24, %s4037_s24, %s3315_s18  }
  0x4e   : > { %s3316_s15 = smov [#allocation6]   ;;  %p4066_p8 = pneg %p3479_p12 }
  0x4f   : > { %s540_s29 = sshll.u32 %s3316_s15, 4  ;;  %s541_s29 = int_to_ptr.vmem [resolvable:$true] %s540_s29 }
  0x50   : > { %s3195_s19 = scalar_lea.vmem %s541_s29, 32  ;;  %p3203_p3 = scmp.lt.s32.totalorder %s541_s29, %s541_s29 }
  0x51   : > { %p3196_p13 = scmp.ne.s32.totalorder %s541_s29, %s3195_s19  ;;  %p3204_p6 = scmp.lt.s32.totalorder %s3195_s19, %s3195_s19 }
  0x53   : > { %p3198_p10 = pnand %p3196_p13, %p4066_p8  ;;  %p3205_p7 = por %p3204_p6, %p3203_p3 }
  0x55   : > { %p3199_p1 = pneg %p3198_p10 }
  0x57   : > { %p3206_p11 = pnand %p3205_p7, %p3199_p1 }
  0x59   : > { %3209 = shalt.err (!%p3206_p11)
}
  0x5a   : > { %s3317_s21 = smov 16   ;;  %s3318_s11 = smov 1  }
  0x5b   : > { %s4067_s13 = sld [smem:[#allocation20_spill]]  ;;  %s639_s15 = scalar_lea.vmem [#allocation9], %s3502_s17 }
  0x5c   : > { %s4068_s12 = sld [smem:[#allocation28_spill]]  ;;  %s646_s19 = sshll.u32 %s639_s15, 4  ;;  %s647_s19 = int_to_ptr.vmem [resolvable:$true] %s646_s19 }
  0x61   : > { %3015 = dma.hbm_to_vmem [thread:$0]  (!%p3479_p12), %s4067_s13, 32, %s541_s29, [#allocation7], %s3317_s21, %s3317_s21, %s3318_s11  }
  0x62   : > { %s3558_s22 = scalar_lea.hbm %s4068_s12, %s2760_s16  ;;  %s3215_s30 = scalar_lea.hbm %s4068_s12, 512 }
  0x63   : > { %s3210_s24 = scalar_lea.hbm %s3558_s22, 256  ;;  %p3216_p12 = scmp.lt.s32.totalorder %s3558_s22, %s4068_s12 }
  0x64   : > { %p3211_p4 = scmp.ne.s32.totalorder %s3558_s22, %s3210_s24  ;;  %p3217_p13 = scmp.lt.s32.totalorder %s3215_s30, %s3210_s24 }
  0x66   : > { %p3213_p9 = pnand %p3211_p4, %p3158_p5  ;;  %p3218_p8 = por %p3217_p13, %p3216_p12 }
  0x68   : > { %p3214_p2 = pneg %p3213_p9 }
  0x6a   : > { %p3219_p10 = pnand %p3218_p8, %p3214_p2 }
  0x6c   : > { %3222 = shalt.err (!%p3219_p10)
}
  0x6d   : > { %s3223_s16 = scalar_lea.vmem %s647_s19, 256  ;;  %s3319_s17 = smov [#allocation9]  }
  0x6e   : > { %p3224_p1 = scmp.ne.s32.totalorder %s647_s19, %s3223_s16  ;;  %s3228_s14 = sshll.u32 %s3319_s17, 4  ;;  %s3229_s14 = int_to_ptr.vmem [resolvable:$false] %s3228_s14 }
  0x6f   : > { %s3230_s25 = scalar_lea.vmem %s3229_s14, 512  ;;  %p3231_p7 = scmp.lt.s32.totalorder %s647_s19, %s3229_s14 }
  0x70   : > { %p3226_p3 = pnand %p3224_p1, %p3158_p5  ;;  %p3232_p11 = scmp.lt.s32.totalorder %s3230_s25, %s3223_s16 }
  0x72   : > { %p3227_p6 = pneg %p3226_p3  ;;  %p3233_p4 = por %p3232_p11, %p3231_p7 }
  0x74   : > { %p3234_p9 = pnand %p3233_p4, %p3227_p6 }
  0x76   : > { %3237 = shalt.err (!%p3234_p9)
}
  0x77   : > { %s4069_s24 = smov 64   ;;  %p4070_p5 = scmp.ne.s32.totalorder %s4061_s23, 0 }
  0x78   : > { %3022 = dma.hbm_to_vmem [thread:$0]  (!%p3488_p0), %s3558_s22, 256, %s647_s19, %s3515_s10, %s4069_s24, %s4069_s24, %s3315_s18  }
  0x79   : > { %690 = sbr.rel (%p4070_p5) target bundleno = 4262 (0x10a6), region = 92  ;;  %p4071_p2 = scmp.eq.s32.totalorder (!%p4070_p5), %s3442_s0, 0 }
  0x7e   : > { %3279 = dma.done.wait (%p4071_p2), [#allocation4], 256   ;;  %p4072_p12 = pmov %p4071_p2 }
  0x7f   : > { %p4073_p13 = pmov %p4071_p2 }
  0x80   : > { %3281 = vsyncadd (%p4072_p12), [#allocation4], 4294967040 }
  0x81   : > { %3283 = dma.done.wait (%p4073_p13), [#allocation7], 32   ;;  %p4074_p8 = pmov %p4071_p2 }
  0x82   : > { %s700_s20 = sand.u32 1, %s3442_s0   ;;  %s702_s10 = sand.u32 1, %s3300_s28  }
  0x83   : > { %3285 = vsyncadd (%p4074_p8), [#allocation7], 4294967264  ;;  %s3595_s18 = sshll.u32 %s702_s10, 4  ;;  %s701_s23 = scalar_lea.sflag [#allocation4], %s700_s20 }
  0x84   : > { %s3598_s13 = scalar_lea.vmem [#allocation8], %s3595_s18  ;;  %p4075_p0 = scmp.ne.s32.totalorder %s4060_s2, 0 }
  0x86   : > { %3287 = dma.done.wait (%p4075_p0), %s701_s23, 512  }
  0x87   : > { %3289 = vsyncadd (%p4075_p0), %s701_s23, 4294966784  ;;  %p816_p10 = scmp.lt.s32.totalorder %s3442_s0, 1  ;;  %s4076_s29 = sld [smem:[#allocation21_spill]] }
  0x88   : > { %s4077_s4 = sld [smem:[#allocation22_spill]]  ;;  %s713_s12 = scalar_lea.vmem [#allocation9], %s3595_s18 }
  0x89   : > { %s3606_s27 = scalar_select %p816_p10, %s3442_s0, 1 }
  0x8a   : > { %s4078_s6 = sld [smem:[#allocation23_spill]]  ;;  %p4087_p1 = scmp.ne.s32.totalorder %s3442_s0, 0 }
  0x8b   : > { %s2762_s1 = sshll.u32 %s3606_s27, 4  ;;  %s4083_s2 = sld [smem:[#allocation30_spill]] }
  0x8c   : > { %s4085_s11 = sld [smem:[#allocation32_spill]] }
  0x8d   : > { %s820_s30 = scalar_lea.vmem %s4076_s29, %s2762_s1  ;;  %s4084_s29 = sld [smem:[#allocation31_spill]] }
  0x8e   : > { %s3619_s16 = scalar_lea.vmem %s4077_s4, %s2762_s1  ;;  %s4086_s14 = sld [smem:[#allocation33_spill]] }
  0x90   : > { %s3628_s10 = scalar_lea.vmem %s4078_s6, %s2762_s1  ;;  %s4082_s1 = sld [smem:[#allocation29_spill]] }
  0x91   : > { %s2765_s6 = sshll.u32 %s3606_s27, 5 }
  0x92   : > { %s3654_s22 = scalar_lea.vmem %s4083_s2, %s2765_s6  ;;  %s862_s4 = scalar_lea.vmem %s4085_s11, %s3606_s27 }
  0x93   : > { %s859_s9 = scalar_lea.vmem %s4084_s29, %s3606_s27  ;;  %870 = sbr.rel (%p4087_p1) target bundleno = 154 (0x9a), region = 112 }
  0x94   : > { %s865_s25 = scalar_lea.vmem %s4086_s14, %s3606_s27 }
  0x96   : > { %s851_s20 = scalar_lea.vmem %s4082_s1, %s3606_s27 }
  0x98   : > { %v871_v0 = vld [vmem:[#allocation3] sm:$0xff]  ;;  %vm873_vm0 = vcmask 261120   ;;  %v872_v1 = vld [vmem:[#allocation3 + $0x8] sm:$0xff] }
  0x99   : > { %874 = vst.msk [vmem:[#allocation2] sm:$0xff] %vm873_vm0, %v871_v0  ;;  %875 = vst.msk [vmem:[#allocation2 + $0x8] sm:$0xff] %vm873_vm0, %v872_v1 }
  0x9a PF: > { %v3078_v2 = vld [vmem:[%s820_s30 + $0x8] sm:$0xff]   ;;  %v3320_v3 = vmov 0.0   ;;  %v3079_v4 = vld [vmem:[%s820_s30] sm:$0xff]   ;;  %vm3321_vm1 = vmmov 0   ;;  %vm902_vm2 = vcmask 261120   ;;  %s4088_s30 = scalar_lea.vmem %s4016_s5, %s3606_s27  ;;  %vm1109_vm3 = vcmask 64512   ;;  %s4090_s2 = scalar_lea.vmem %s4018_s7, %s3606_s27 }
  0x9b   : > { %2829 = vmatprep.subr.bf16.mxu1 %v3320_v3  ;;  %2845 = vmatprep.subr.bf16.mxu0 %v3320_v3  ;;  %v3080_v7 = vld [vmem:[%s3619_s16 + $0x8] sm:$0xff]   ;;  %v3081_v9 = vld [vmem:[%s3619_s16] sm:$0xff]   ;;  %s3322_s24 = smov 120   ;;  %vm1229_vm4 = vcmask 1043456   ;;  %s3323_s19 = smov 112   ;;  %vm2345_vm5 = vcmask 523264  }
  0x9c   : > { %2830 = vmatpush3.bf16.msra.mxu1 %v3078_v2  ;;  %2833 = vmatprep.mubr.msk.bf16.mxu1 %vm3321_vm1, %v3320_v3  ;;  %v3082_v10 = vld [vmem:[%s3628_s10 + $0x8] sm:$0xff]   ;;  %v3083_v11 = vld [vmem:[%s3628_s10] sm:$0xff]   ;;  %s4089_s10 = scalar_lea.vmem %s4014_s3, %s3606_s27  ;;  %s3324_s26 = smov 104  }
  0x9d   : > { %2831 = vmatprep.subr.bf16.mxu1 %v3320_v3  ;;  %2849 = vmatprep.mubr.msk.bf16.mxu0 %vm3321_vm1, %v3320_v3  ;;  %v2705_v16 = vld [vmem:[%s4088_s30] ss:$0 sm:$0xff]  ;;  %v3754_v49 = vld [vmem:[#allocation6 + $0x1] ss:$0 sm:$0xff]  ;;  %s4091_s15 = sld [smem:[#allocation25_spill]]  ;;  %p3028_p3 = scmp.eq.s32.totalorder %s3442_s0, 1 }
  0x9e   : > { %2846 = vmatpush3.bf16.msra.mxu0 %v3082_v10  ;;  %v2701_v17 = vld [vmem:[%s4089_s10] ss:$0 sm:$0xff]  ;;  %s4093_s17 = sld [smem:[#allocation26_spill]] }
  0x9f   : > { %2847 = vmatprep.subr.bf16.mxu0 %v3320_v3  ;;  %v2709_v34 = vld [vmem:[%s4090_s2] ss:$0 sm:$0xff]  ;;  %s4095_s28 = sld [smem:[#allocation27_spill]] }
  0xa0   : > { %v3675_v5 = vld [vmem:[#allocation2] sm:$0xff]  ;;  %v3677_v6 = vld [vmem:[#allocation2 + $0x8] sm:$0xff]  ;;  %2832 = vmatpush3.bf16.msra.mxu1 %v3079_v4 }
  0xa1   : > { %v878_v8 = vpack.c.bf16 %v3677_v6, %v3675_v5  ;;  %2837 = vmatprep.subr.bf16.mxu1 %v3320_v3  ;;  %v3751_v45 = vld [vmem:[#allocation6] ss:$0 sm:$0xff] }
  0xa2   : > { %2848 = vmatpush3.bf16.msra.mxu0 %v3083_v11 }
  0xa3   : > { %2834 = vmatmul.mubr.msk.bf16.vlgmr.msra.gmra.mxu1 %vm902_vm2, %v878_v8  ;;  %2859 = vmatprep.subr.bf16.mxu0 %v3320_v3  ;;  %s4092_s11 = scalar_lea.vmem %s4091_s15, %s3606_s27 }
  0xa4   : > { %2838 = vmatpush3.bf16.msra.mxu1 %v3080_v7  ;;  %2841 = vmatprep.mubr.msk.bf16.mxu1 %vm3321_vm1, %v3320_v3  ;;  %s4094_s14 = scalar_lea.vmem %s4093_s17, %s3606_s27 }
  0xa5   : > { %2839 = vmatprep.subr.bf16.mxu1 %v3320_v3  ;;  %2850 = vmatmul.mubr.msk.bf16.vlgmr.msra.gmra.mxu0 %vm902_vm2, %v878_v8  ;;  %s4096_s30 = scalar_lea.vmem %s4095_s28, %s3606_s27 }
  0xa6   : > { %2861 = vmatprep.mubr.msk.bf16.mxu0 %vm3321_vm1, %v3320_v3 }
  0xa8   : > { %2840 = vmatpush3.bf16.msra.mxu1 %v3081_v9 }
  0xa9   : > { %2853 = vmatprep.subr.bf16.mxu1 %v3320_v3 }
  0xab   : > { %2842 = vmatmul.mubr.msk.bf16.vlgmr.msra.gmra.mxu1 %vm902_vm2, %v878_v8 }
  0xac   : > { %2855 = vmatprep.mubr.msk.bf16.mxu1 %vm3321_vm1, %v3320_v3 }
 0x163   : > { %v940_v12 = vpop.f32.mrf.mxu1 }
 0x164   : > { %v941_v21 = vadd.f32 %v2701_v17, %v940_v12 }
 0x165   : > { %v2835_v13 = vpop.f32.mrf.mxu1  ;;  %v1070_v35 = vpop.f32.mrf.mxu0 }
 0x166   : > { %v947_v27 = vmul.f32 0.35355338, %v941_v21  ;;  %v1071_v37 = vadd.f32 %v2709_v34, %v1070_v35 }
 0x167   : > { %v943_v14 = vpop.f32.mrf.mxu1  ;;  %v2851_v36 = vpop.f32.mrf.mxu0 }
 0x168   : > { %v944_v28 = vadd.f32 %v2701_v17, %v943_v14  ;;  %v3723_v31 = vpack.c.bf16 %v947_v27, %v947_v27  ;;  %v3741_v41 = vpack.c.bf16 %v1071_v37, %v1071_v37 }
 0x169   : > { %v2836_v15 = vpop.f32.mrf.mxu1  ;;  %v1073_v38 = vpop.f32.mrf.mxu0 }
 0x16a   : > { %v948_v32 = vmul.f32 0.35355338, %v944_v28  ;;  %v1074_v39 = vadd.f32 %v2709_v34, %v1073_v38  ;;  %v1231_v43 = vsel %vm1229_vm4, %v3741_v41, 0 }
 0x16b   : > { %v1006_v18 = vpop.f32.mrf.mxu1  ;;  %v2852_v40 = vpop.f32.mrf.mxu0 }
 0x16c   : > { %v1007_v19 = vadd.f32 %v2705_v16, %v1006_v18  ;;  %v3730_v33 = vpack.c.bf16 %v948_v32, %v948_v32  ;;  %v3743_v42 = vpack.c.bf16 %v1074_v39, %v1074_v39 }
 0x16d   : > { %v2843_v20 = vpop.f32.mrf.mxu1 }
 0x16e   : > { %v3712_v22 = vpack.c.bf16 %v1007_v19, %v1007_v19  ;;  %v1277_v44 = vsel %vm1229_vm4, %v3743_v42, 0 }
 0x16f   : > { %v1009_v23 = vpop.f32.mrf.mxu1 }
 0x170   : > { %v1010_v24 = vadd.f32 %v2705_v16, %v1009_v23  ;;  %v1114_v25 = vsel %vm1109_vm3, %v3712_v22, 0 }
 0x171   : > { %v2844_v26 = vpop.f32.mrf.mxu1  ;;  %2854 = vmatpush3.bf16.xpose.msra.mxu1 %v1114_v25 }
 0x172   : > { %v3716_v29 = vpack.c.bf16 %v1010_v24, %v1010_v24  ;;  %2865 = vmatprep.subr.bf16.mxu1 %v3320_v3 }
 0x174   : > { %1373 = vrot.lane.b32.xlu1 %v3716_v29, %s3322_s24  ;;  %v1160_v30 = vsel %vm1109_vm3, %v3716_v29, 0 }
 0x175   : > { %2860 = vmatpush3.bf16.xpose.msra.mxu0 %v1160_v30 }
 0x176   : > { %2871 = vmatprep.subr.bf16.mxu0 %v3320_v3 }
 0x178   : > { %2856 = vmatmul.mubr.msk.bf16.vlgmr.msra.gmra.mxu1 %vm1109_vm3, %v3723_v31 }
 0x179   : > { %2867 = vmatprep.mubr.msk.bf16.mxu1 %vm3321_vm1, %v3320_v3  ;;  %2866 = vmatpush3.bf16.msra.mxu1 %v1231_v43 }
 0x17a   : > { %2877 = vmatprep.subr.bf16.mxu1 %v3320_v3 }
 0x17c   : > { %2862 = vmatmul.mubr.msk.bf16.vlgmr.msra.gmra.mxu0 %vm1109_vm3, %v3730_v33 }
 0x17d   : > { %2873 = vmatprep.mubr.msk.bf16.mxu0 %vm3321_vm1, %v3320_v3  ;;  %2872 = vmatpush3.bf16.msra.mxu0 %v1277_v44 }
 0x17e   : > { %2883 = vmatprep.subr.bf16.mxu0 %v3320_v3 }
 0x1e6   : > { %v1374_v8 = vpop.permute.xlu1 %1373 }
 0x1e7   : > { %v1379_v19 = vsel %vm1109_vm3, %v1374_v8, 0 }
 0x238   : > { %v1150_v46 = vpop.f32.mrf.mxu1 }
 0x239   : > { %v1151_v47 = vadd.f32 %v3751_v45, %v1150_v46 }
 0x23a   : > { %v2857_v48 = vpop.f32.mrf.mxu1 }
 0x23b   : > { %v1202_v50 = vsel %vm1109_vm3, %v1151_v47, -inf }
 0x23c   : > { %v1196_v51 = vpop.f32.mrf.mxu0  ;;  %1203 = vmax.xlane.f32.xlu0 %v1202_v50  ;;  %v1153_v52 = vpop.f32.mrf.mxu1 }
 0x23d   : > { %v1197_v53 = vadd.f32 %v3754_v49, %v1196_v51 }
 0x23e   : > { %v2858_v54 = vpop.f32.mrf.mxu1  ;;  %v2863_v55 = vpop.f32.mrf.mxu0 }
 0x23f   : > { %v1205_v56 = vsel %vm1109_vm3, %v1197_v53, -inf }
 0x240   : > { %v1199_v57 = vpop.f32.mrf.mxu0  ;;  %1206 = vmax.xlane.f32.xlu0 %v1205_v56 }
 0x242   : > { %v2864_v58 = vpop.f32.mrf.mxu0 }
 0x256   : > { %1323 = vrot.lane.b32.xlu0 %v3712_v22, %s3322_s24 }
 0x2c5   : > { %v1204_v59 = vpop.xlane.xlu0 %1203 }
 0x2c6   : > { %v1208_v60 = vsub.f32 %v1151_v47, %v1204_v59 }
 0x2c8   : > { %v1210_v61 = vmul.f32 1.442695, %v1208_v60 }
 0x2c9   : > { %v1207_v62 = vpop.xlane.xlu0 %1206 }
 0x2ca   : > { %3090 = vpow2.f32 %v1210_v61  ;;  %v1209_v63 = vsub.f32 %v1197_v53, %v1207_v62 }
 0x2cc   : > { %v1212_v0 = vmul.f32 1.442695, %v1209_v63 }
 0x2cd   : > { %v1324_v13 = vpop.permute.xlu0 %1323 }
 0x2ce   : > { %3092 = vpow2.f32 %v1212_v0  ;;  %v1329_v16 = vsel %vm1109_vm3, %v1324_v13, 0 }
 0x2d7   : > { %v3091_v1 = vpop.eup %3090 }
 0x2d8   : > { %v1214_v2 = vsel %vm1109_vm3, %v3091_v1, 0.0 }
 0x2d9   : > { %1215 = vadd.xlane.f32.xlu1 %v1214_v2 }
 0x2db   : > { %v3093_v4 = vpop.eup %3092 }
 0x2dc   : > { %v1217_v7 = vsel %vm1109_vm3, %v3093_v4, 0.0 }
 0x2dd   : > { %1218 = vadd.xlane.f32.xlu1 %v1217_v7 }
 0x2ee   : > { %1321 = vrot.lane.b32.xlu1 %v3723_v31, %s3322_s24 }
 0x2f2   : > { %1371 = vrot.lane.b32.xlu1 %v3730_v33, %s3322_s24 }
 0x362   : > { %v1216_v9 = vpop.xlane.xlu1 %1215 }
 0x363   : > { %3094 = vrcp.f32 %v1216_v9 }
 0x366   : > { %v1219_v10 = vpop.xlane.xlu1 %1218 }
 0x367   : > { %3096 = vrcp.f32 %v1219_v10  ;;  %v1320_v10 = vld [vmem:[%s3598_s13] sm:$0xf] }
 0x368   : > { %v1594_v13 = vsel %vm1229_vm4, %v1320_v10, 0 }
 0x36a   : > { %v1322_v20 = vpop.permute.xlu1 %1321 }
 0x36e   : > { %v1372_v21 = vpop.permute.xlu1 %1371 }
 0x370   : > { %v3095_v11 = vpop.eup %3094 }
 0x371   : > { %v1221_v12 = vmul.f32 %v3095_v11, %v3091_v1 }
 0x373   : > { %v1224_v14 = vpack.c.bf16 %v1221_v12, %v1221_v12 }
 0x374   : > { %v3097_v15 = vpop.eup %3096 }
 0x375   : > { %2868 = vmatmul.mubr.msk.bf16.vlgmr.msra.gmra.mxu1 %vm1109_vm3, %v1224_v14  ;;  %v1223_v17 = vmul.f32 %v3097_v15, %v3093_v4 }
 0x376   : > { %2878 = vmatpush3.bf16.xpose.msra.mxu1 %v1329_v16  ;;  %2879 = vmatprep.mubr.msk.bf16.mxu1 %vm3321_vm1, %v3320_v3 }
 0x377   : > { %v1225_v18 = vpack.c.bf16 %v1223_v17, %v1223_v17  ;;  %2889 = vmatprep.subr.bf16.mxu1 %v3320_v3 }
 0x379   : > { %2874 = vmatmul.mubr.msk.bf16.vlgmr.msra.gmra.mxu0 %vm1109_vm3, %v1225_v18  ;;  %v1542_v18 = vld [vmem:[%s3598_s13 + $0x4] sm:$0xf] }
 0x37a   : > { %2884 = vmatpush3.bf16.xpose.msra.mxu0 %v1379_v19  ;;  %2885 = vmatprep.mubr.msk.bf16.mxu0 %vm3321_vm1, %v3320_v3  ;;  %v1547_v19 = vsel %vm1229_vm4, %v1542_v18, 0 }
 0x37b   : > { %2895 = vmatprep.subr.bf16.mxu0 %v3320_v3 }
 0x37d   : > { %2880 = vmatmul.mubr.msk.bf16.vlgmr.msra.gmra.mxu1 %vm1109_vm3, %v1322_v20 }
 0x37e   : > { %2891 = vmatprep.mubr.msk.bf16.mxu1 %vm3321_vm1, %v3320_v3 }
 0x381   : > { %2886 = vmatmul.mubr.msk.bf16.vlgmr.msra.gmra.mxu0 %vm1109_vm3, %v1372_v21 }
 0x382   : > { %2897 = vmatprep.mubr.msk.bf16.mxu0 %vm3321_vm1, %v3320_v3 }
 0x435   : > { %v3783_v23 = vpop.f32.mrf.mxu1 }
 0x437   : > { %v2869_v24 = vpop.f32.mrf.mxu1 }
 0x439   : > { %v1270_v25 = vpop.f32.mrf.mxu1  ;;  %v3785_v26 = vpop.f32.mrf.mxu0 }
 0x43a   : > { %v1319_v27 = vpack.c.bf16 %v3785_v26, %v3783_v23 }
 0x43b   : > { %v2870_v28 = vpop.f32.mrf.mxu1  ;;  %v2875_v30 = vpop.f32.mrf.mxu0 }
 0x43d   : > { %v1316_v32 = vpop.f32.mrf.mxu0  ;;  %v1365_v34 = vpop.f32.mrf.mxu1 }
 0x43e   : > { %v1366_v35 = vadd.f32 %v3751_v45, %v1365_v34 }
 0x43f   : > { %v2876_v36 = vpop.f32.mrf.mxu0  ;;  %v2881_v37 = vpop.f32.mrf.mxu1 }
 0x440   : > { %v1421_v38 = vsel %vm1109_vm3, %v1366_v35, -inf }
 0x441   : > { %v1415_v39 = vpop.f32.mrf.mxu0  ;;  %1422 = vmax.xlane.f32.xlu0 %v1421_v38  ;;  %v1368_v40 = vpop.f32.mrf.mxu1 }
 0x442   : > { %v1416_v43 = vadd.f32 %v3754_v49, %v1415_v39 }
 0x443   : > { %v2882_v44 = vpop.f32.mrf.mxu1  ;;  %v2887_v46 = vpop.f32.mrf.mxu0 }
 0x444   : > { %v1424_v47 = vsel %vm1109_vm3, %v1416_v43, -inf }
 0x445   : > { %1425 = vmax.xlane.f32.xlu1 %v1424_v47  ;;  %v1418_v48 = vpop.f32.mrf.mxu0 }
 0x447   : > { %v2888_v50 = vpop.f32.mrf.mxu0 }
 0x456   : > { %1493 = vrot.lane.b32.xlu1 %v3743_v42, %s3322_s24 }
 0x45a   : > { %1639 = vrot.lane.b32.xlu1 %v3712_v22, %s3323_s19 }
 0x45e   : > { %1689 = vrot.lane.b32.xlu1 %v3716_v29, %s3323_s19 }
 0x462   : > { %1687 = vrot.lane.b32.xlu1 %v3730_v33, %s3323_s19 }
 0x4ca   : > { %v1423_v51 = vpop.xlane.xlu0 %1422 }
 0x4cb   : > { %v1427_v52 = vsub.f32 %v1366_v35, %v1423_v51 }
 0x4cd   : > { %v1429_v53 = vmul.f32 1.442695, %v1427_v52 }
 0x4ce   : > { %v1426_v54 = vpop.xlane.xlu1 %1425 }
 0x4cf   : > { %3098 = vpow2.f32 %v1429_v53  ;;  %v1428_v55 = vsub.f32 %v1416_v43, %v1426_v54 }
 0x4d1   : > { %v1431_v56 = vmul.f32 1.442695, %v1428_v55 }
 0x4d2   : > { %v1494_v57 = vpop.permute.xlu1 %1493 }
 0x4d3   : > { %3100 = vpow2.f32 %v1431_v56  ;;  %v1499_v58 = vsel %vm1229_vm4, %v1494_v57, 0 }
 0x4d4   : > { %2896 = vmatpush3.bf16.msra.mxu0 %v1499_v58 }
 0x4d5   : > { %2907 = vmatprep.subr.bf16.mxu0 %v3320_v3 }
 0x4d6   : > { %v1640_v14 = vpop.permute.xlu1 %1639 }
 0x4d7   : > { %v1645_v28 = vsel %vm1109_vm3, %v1640_v14, 0 }
 0x4da   : > { %v1690_v15 = vpop.permute.xlu1 %1689 }
 0x4db   : > { %v1695_v16 = vsel %vm1109_vm3, %v1690_v15, 0 }
 0x4dc   : > { %v3099_v59 = vpop.eup %3098 }
 0x4dd   : > { %v1433_v60 = vsel %vm1109_vm3, %v3099_v59, 0.0 }
 0x4de   : > { %1434 = vadd.xlane.f32.xlu0 %v1433_v60  ;;  %v1688_v17 = vpop.permute.xlu1 %1687 }
 0x4e0   : > { %v3101_v61 = vpop.eup %3100 }
 0x4e1   : > { %v1436_v62 = vsel %vm1109_vm3, %v3101_v61, 0.0 }
 0x4e2   : > { %1437 = vadd.xlane.f32.xlu0 %v1436_v62 }
 0x4f8   : > { %1445 = vrot.lane.b32.xlu0 %v3741_v41, %s3322_s24 }
 0x4fc   : > { %1637 = vrot.lane.b32.xlu0 %v3723_v31, %s3323_s19 }
 0x567   : > { %v1435_v63 = vpop.xlane.xlu0 %1434 }
 0x568   : > { %3102 = vrcp.f32 %v1435_v63 }
 0x56b   : > { %v1438_v0 = vpop.xlane.xlu0 %1437 }
 0x56c   : > { %3104 = vrcp.f32 %v1438_v0 }
 0x56f   : > { %v1446_v1 = vpop.permute.xlu0 %1445 }
 0x570   : > { %v1451_v2 = vsel %vm1229_vm4, %v1446_v1, 0 }
 0x571   : > { %2890 = vmatpush3.bf16.msra.mxu1 %v1451_v2 }
 0x572   : > { %2901 = vmatprep.subr.bf16.mxu1 %v3320_v3 }
 0x573   : > { %v1638_v35 = vpop.permute.xlu0 %1637 }
 0x575   : > { %v3103_v4 = vpop.eup %3102 }
 0x576   : > { %v1440_v7 = vmul.f32 %v3103_v4, %v3099_v59 }
 0x578   : > { %v1443_v8 = vpack.c.bf16 %v1440_v7, %v1440_v7 }
 0x579   : > { %v3105_v9 = vpop.eup %3104 }
 0x57a   : > { %2892 = vmatmul.mubr.msk.bf16.vlgmr.msra.gmra.mxu1 %vm1109_vm3, %v1443_v8  ;;  %v1442_v11 = vmul.f32 %v3105_v9, %v3101_v61 }
 0x57b   : > { %2903 = vmatprep.mubr.msk.bf16.mxu1 %vm3321_vm1, %v3320_v3  ;;  %2902 = vmatpush3.bf16.msra.mxu1 %v1547_v19 }
 0x57c   : > { %v1444_v12 = vpack.c.bf16 %v1442_v11, %v1442_v11  ;;  %2913 = vmatprep.subr.bf16.mxu1 %v3320_v3 }
 0x57e   : > { %2898 = vmatmul.mubr.msk.bf16.vlgmr.msra.gmra.mxu0 %vm1109_vm3, %v1444_v12 }
 0x57f   : > { %2908 = vmatpush3.bf16.msra.mxu0 %v1594_v13  ;;  %2909 = vmatprep.mubr.msk.bf16.mxu0 %vm3321_vm1, %v3320_v3 }
 0x580   : > { %2919 = vmatprep.subr.bf16.mxu0 %v3320_v3 }
 0x586   : > { %2910 = vmatmul.mubr.msk.bf16.vlgmr.msra.gmra.mxu0 %vm1109_vm3, %v1319_v27 }
 0x587   : > { %2920 = vmatpush3.bf16.xpose.msra.mxu0 %v1695_v16  ;;  %2921 = vmatprep.mubr.msk.bf16.mxu0 %vm3321_vm1, %v3320_v3 }
 0x588   : > { %2931 = vmatprep.subr.bf16.mxu0 %v3320_v3 }
 0x58e   : > { %2922 = vmatmul.mubr.msk.bf16.vlgmr.msra.gmra.mxu0 %vm1109_vm3, %v1688_v17 }
 0x58f   : > { %2933 = vmatprep.mubr.msk.bf16.mxu0 %vm3321_vm1, %v3320_v3 }
 0x63a   : > { %v1487_v20 = vpop.f32.mrf.mxu1 }
 0x63c   : > { %v2893_v21 = vpop.f32.mrf.mxu1 }
 0x63e   : > { %v1490_v23 = vpop.f32.mrf.mxu1  ;;  %v1535_v24 = vpop.f32.mrf.mxu0 }
 0x63f   : > { %v1541_v25 = vpack.c.bf16 %v1535_v24, %v1487_v20  ;;  %v1858_v24 = vld [vmem:[%s3598_s13 + $0x8] sm:$0xf] }
 0x640   : > { %v2894_v26 = vpop.f32.mrf.mxu1  ;;  %v2899_v27 = vpop.f32.mrf.mxu0 }
 0x641   : > { %2904 = vmatmul.mubr.msk.bf16.vlgmr.msra.gmra.mxu1 %vm1109_vm3, %v1541_v25  ;;  %v1863_v25 = vsel %vm1229_vm4, %v1858_v24, 0 }
 0x642   : > { %2914 = vmatpush3.bf16.xpose.msra.mxu1 %v1645_v28  ;;  %v1538_v30 = vpop.f32.mrf.mxu0  ;;  %2915 = vmatprep.mubr.msk.bf16.mxu1 %vm3321_vm1, %v3320_v3 }
 0x643   : > { %2925 = vmatprep.subr.bf16.mxu1 %v3320_v3 }
 0x644   : > { %v2900_v32 = vpop.f32.mrf.mxu0 }
 0x646   : > { %v3839_v34 = vpop.f32.mrf.mxu0 }
 0x648   : > { %v2911_v36 = vpop.f32.mrf.mxu0 }
 0x649   : > { %2916 = vmatmul.mubr.msk.bf16.vlgmr.msra.gmra.mxu1 %vm1109_vm3, %v1638_v35 }
 0x64a   : > { %v3842_v37 = vpop.f32.mrf.mxu0  ;;  %2927 = vmatprep.mubr.msk.bf16.mxu1 %vm3321_vm1, %v3320_v3 }
 0x64c   : > { %v2912_v38 = vpop.f32.mrf.mxu0 }
 0x64e   : > { %v1731_v39 = vpop.f32.mrf.mxu0 }
 0x64f   : > { %v1732_v40 = vadd.f32 %v3754_v49, %v1731_v39 }
 0x650   : > { %v2923_v43 = vpop.f32.mrf.mxu0 }
 0x651   : > { %v1740_v44 = vsel %vm1109_vm3, %v1732_v40, -inf }
 0x652   : > { %1741 = vmax.xlane.f32.xlu1 %v1740_v44  ;;  %v1734_v46 = vpop.f32.mrf.mxu0 }
 0x654   : > { %v2924_v47 = vpop.f32.mrf.mxu0 }
 0x663   : > { %1809 = vrot.lane.b32.xlu1 %v3743_v42, %s3323_s19 }
 0x667   : > { %1910 = vrot.lane.b32.xlu1 %v3712_v22, %s3324_s26 }
 0x66b   : > { %1960 = vrot.lane.b32.xlu1 %v3716_v29, %s3324_s26 }
 0x66f   : > { %1958 = vrot.lane.b32.xlu1 %v3730_v33, %s3324_s26 }
 0x6db   : > { %v1742_v48 = vpop.xlane.xlu1 %1741 }
 0x6dc   : > { %v1744_v52 = vsub.f32 %v1732_v40, %v1742_v48 }
 0x6de   : > { %v1747_v53 = vmul.f32 1.442695, %v1744_v52 }
 0x6df   : > { %v1810_v50 = vpop.permute.xlu1 %1809 }
 0x6e0   : > { %v1815_v51 = vsel %vm1229_vm4, %v1810_v50, 0  ;;  %3106 = vpow2.f32 %v1747_v53 }
 0x6e1   : > { %2932 = vmatpush3.bf16.msra.mxu0 %v1815_v51 }
 0x6e2   : > { %2943 = vmatprep.subr.bf16.mxu0 %v3320_v3 }
 0x6e3   : > { %v1911_v10 = vpop.permute.xlu1 %1910 }
 0x6e4   : > { %v1916_v12 = vsel %vm1109_vm3, %v1911_v10, 0 }
 0x6e7   : > { %v1961_v36 = vpop.permute.xlu1 %1960 }
 0x6e8   : > { %v1966_v43 = vsel %vm1109_vm3, %v1961_v36, 0 }
 0x6eb   : > { %v1959_v46 = vpop.permute.xlu1 %1958 }
 0x6ed   : > { %v3107_v59 = vpop.eup %3106 }
 0x6ee   : > { %v1752_v62 = vsel %vm1109_vm3, %v3107_v59, 0.0 }
 0x701   : > { %v3858_v54 = vpop.f32.mrf.mxu1 }
 0x702   : > { %v1631_v53 = vadd.f32 %v3839_v34, %v3858_v54 }
 0x703   : > { %v2905_v55 = vpop.f32.mrf.mxu1 }
 0x705   : > { %v3860_v22 = vpop.f32.mrf.mxu1 }
 0x707   : > { %v2906_v56 = vpop.f32.mrf.mxu1 }
 0x709   : > { %v1681_v29 = vpop.f32.mrf.mxu1 }
 0x70a   : > { %v1682_v57 = vadd.f32 %v3751_v45, %v1681_v29 }
 0x70b   : > { %v2917_v33 = vpop.f32.mrf.mxu1 }
 0x70c   : > { %v1737_v58 = vsel %vm1109_vm3, %v1682_v57, -inf }
 0x70d   : > { %1738 = vmax.xlane.f32.xlu0 %v1737_v58  ;;  %v1684_v60 = vpop.f32.mrf.mxu1 }
 0x70f   : > { %v2918_v61 = vpop.f32.mrf.mxu1 }
 0x711   : > { %1753 = vadd.xlane.f32.xlu0 %v1752_v62 }
 0x796   : > { %v1739_v63 = vpop.xlane.xlu0 %1738 }
 0x797   : > { %v1743_v0 = vsub.f32 %v1682_v57, %v1739_v63  ;;  %v1634_v57 = vadd.f32 %v3842_v37, %v3860_v22 }
 0x799   : > { %v1745_v1 = vmul.f32 1.442695, %v1743_v0 }
 0x79a   : > { %v1754_v2 = vpop.xlane.xlu0 %1753 }
 0x79b   : > { %3108 = vpow2.f32 %v1745_v1 }
 0x79c   : > { %3110 = vrcp.f32 %v1754_v2 }
 0x7a8   : > { %v3109_v4 = vpop.eup %3108 }
 0x7a9   : > { %v3111_v7 = vpop.eup %3110  ;;  %v1749_v8 = vsel %vm1109_vm3, %v3109_v4, 0.0 }
 0x7aa   : > { %1750 = vadd.xlane.f32.xlu0 %v1749_v8  ;;  %v1758_v9 = vmul.f32 %v3111_v7, %v3107_v59 }
 0x7ac   : > { %v1760_v11 = vpack.c.bf16 %v1758_v9, %v1758_v9 }
 0x7ae   : > { %2934 = vmatmul.mubr.msk.bf16.vlgmr.msra.gmra.mxu0 %vm1109_vm3, %v1760_v11 }
 0x7af   : > { %2944 = vmatpush3.bf16.xpose.msra.mxu0 %v1916_v12  ;;  %2945 = vmatprep.mubr.msk.bf16.mxu0 %vm3321_vm1, %v3320_v3 }
 0x7b0   : > { %2955 = vmatprep.subr.bf16.mxu0 %v3320_v3 }
 0x7c0   : > { %1761 = vrot.lane.b32.xlu0 %v3741_v41, %s3323_s19 }
 0x7c4   : > { %1908 = vrot.lane.b32.xlu0 %v3723_v31, %s3324_s26 }
 0x833   : > { %v1751_v13 = vpop.xlane.xlu0 %1750 }
 0x834   : > { %3112 = vrcp.f32 %v1751_v13 }
 0x837   : > { %v1762_v14 = vpop.permute.xlu0 %1761 }
 0x838   : > { %v1767_v15 = vsel %vm1229_vm4, %v1762_v14, 0 }
 0x839   : > { %2926 = vmatpush3.bf16.msra.mxu1 %v1767_v15  ;;  %v2129_v15 = vld [vmem:[%s3598_s13 + $0xc] sm:$0xf]  ;;  %s3325_s13 = smov [#allocation10]  }
 0x83a   : > { %2937 = vmatprep.subr.bf16.mxu1 %v3320_v3  ;;  %s2446_s21 = sshll.u32 %s3325_s13, 4  ;;  %s2447_s21 = int_to_ptr.vmem [resolvable:$true] %s2446_s21 }
 0x83b   : > { %v1909_v16 = vpop.permute.xlu0 %1908  ;;  %p3245_p4 = scmp.lt.s32.totalorder %s2447_s21, %s2447_s21 }
 0x83c   : > { %2946 = vmatmul.mubr.msk.bf16.vlgmr.msra.gmra.mxu0 %vm1109_vm3, %v1909_v16  ;;  %v2134_v16 = vsel %vm1229_vm4, %v2129_v15, 0 }
 0x83d   : > { %2957 = vmatprep.mubr.msk.bf16.mxu0 %vm3321_vm1, %v3320_v3 }
 0x841   : > { %v3113_v17 = vpop.eup %3112 }
 0x842   : > { %v1756_v18 = vmul.f32 %v3113_v17, %v3109_v4 }
 0x844   : > { %v1759_v19 = vpack.c.bf16 %v1756_v18, %v1756_v18 }
 0x846   : > { %2928 = vmatmul.mubr.msk.bf16.vlgmr.msra.gmra.mxu1 %vm1109_vm3, %v1759_v19 }
 0x847   : > { %2939 = vmatprep.mubr.msk.bf16.mxu1 %vm3321_vm1, %v3320_v3  ;;  %2938 = vmatpush3.bf16.msra.mxu1 %v1863_v25 }
 0x848   : > { %2949 = vmatprep.subr.bf16.mxu1 %v3320_v3 }
 0x86e   : > { %v1851_v31 = vpop.f32.mrf.mxu0 }
 0x870   : > { %v2935_v20 = vpop.f32.mrf.mxu0 }
 0x872   : > { %v1854_v21 = vpop.f32.mrf.mxu0 }
 0x874   : > { %v2936_v23 = vpop.f32.mrf.mxu0 }
 0x8fc   : > { %v1952_v26 = vpop.f32.mrf.mxu0 }
 0x8fd   : > { %v1953_v27 = vadd.f32 %v3751_v45, %v1952_v26 }
 0x8fe   : > { %v2947_v28 = vpop.f32.mrf.mxu0 }
 0x8ff   : > { %v2008_v30 = vsel %vm1109_vm3, %v1953_v27, -inf }
 0x900   : > { %2009 = vmax.xlane.f32.xlu0 %v2008_v30  ;;  %v1955_v32 = vpop.f32.mrf.mxu0 }
 0x902   : > { %v2948_v35 = vpop.f32.mrf.mxu0 }
 0x906   : > { %v1803_v38 = vpop.f32.mrf.mxu1 }
 0x907   : > { %v1857_v39 = vpack.c.bf16 %v1851_v31, %v1803_v38 }
 0x908   : > { %v2929_v40 = vpop.f32.mrf.mxu1 }
 0x909   : > { %2940 = vmatmul.mubr.msk.bf16.vlgmr.msra.gmra.mxu1 %vm1109_vm3, %v1857_v39 }
 0x90a   : > { %2950 = vmatpush3.bf16.xpose.msra.mxu1 %v1966_v43  ;;  %v1806_v44 = vpop.f32.mrf.mxu1  ;;  %2951 = vmatprep.mubr.msk.bf16.mxu1 %vm3321_vm1, %v3320_v3 }
 0x90b   : > { %2961 = vmatprep.subr.bf16.mxu1 %v3320_v3 }
 0x90c   : > { %v2930_v45 = vpop.f32.mrf.mxu1 }
 0x911   : > { %2952 = vmatmul.mubr.msk.bf16.vlgmr.msra.gmra.mxu1 %vm1109_vm3, %v1959_v46 }
 0x912   : > { %2963 = vmatprep.mubr.msk.bf16.mxu1 %vm3321_vm1, %v3320_v3 }
 0x989   : > { %v2010_v47 = vpop.xlane.xlu0 %2009 }
 0x98a   : > { %v2014_v48 = vsub.f32 %v1953_v27, %v2010_v47  ;;  %v2741_v27 = vld [vmem:[%s4092_s11] ss:$0 sm:$0xff] }
 0x98c   : > { %v2016_v50 = vmul.f32 1.442695, %v2014_v48 }
 0x98e   : > { %3114 = vpow2.f32 %v2016_v50 }
 0x99b   : > { %v3115_v51 = vpop.eup %3114 }
 0x99c   : > { %v2020_v52 = vsel %vm1109_vm3, %v3115_v51, 0.0 }
 0x99d   : > { %2021 = vadd.xlane.f32.xlu0 %v2020_v52 }
 0x9c9   : > { %v1899_v55 = vpop.f32.mrf.mxu1 }
 0x9ca   : > { %v1906_v56 = vadd.f32 %v1899_v55, %v1631_v53 }
 0x9cb   : > { %v2941_v29 = vpop.f32.mrf.mxu1 }
 0x9cc   : > { %v3085_v29 = vld [vmem:[%s713_s12] sm:$0xff]  }
 0x9cd   : > { %v1902_v33 = vpop.f32.mrf.mxu1 }
 0x9ce   : > { %v1907_v58 = vadd.f32 %v1902_v33, %v1634_v57  ;;  %v3086_v57 = vld [vmem:[%s3654_s22 + $0x18] sm:$0xff]  }
 0x9cf   : > { %v2942_v59 = vpop.f32.mrf.mxu1 }
 0x9d1   : > { %v2002_v60 = vpop.f32.mrf.mxu1 }
 0x9d2   : > { %v2003_v61 = vadd.f32 %v3754_v49, %v2002_v60 }
 0x9d3   : > { %v2953_v62 = vpop.f32.mrf.mxu1 }
 0x9d4   : > { %v2011_v63 = vsel %vm1109_vm3, %v2003_v61, -inf }
 0x9d5   : > { %2012 = vmax.xlane.f32.xlu1 %v2011_v63  ;;  %v2005_v0 = vpop.f32.mrf.mxu1 }
 0x9d7   : > { %v2954_v1 = vpop.f32.mrf.mxu1 }
 0x9d8   : > { %v2742_v1 = vld [vmem:[%s4094_s14] ss:$0 sm:$0xff] }
 0x9e6   : > { %2080 = vrot.lane.b32.xlu1 %v3743_v42, %s3324_s26 }
 0xa26   : > { %v2022_v7 = vpop.xlane.xlu0 %2021 }
 0xa5e   : > { %v2013_v34 = vpop.xlane.xlu1 %2012 }
 0xa5f   : > { %v2015_v54 = vsub.f32 %v2003_v61, %v2013_v34 }
 0xa61   : > { %v2018_v2 = vmul.f32 1.442695, %v2015_v54 }
 0xa62   : > { %v2081_v4 = vpop.permute.xlu1 %2080 }
 0xa63   : > { %3116 = vpow2.f32 %v2018_v2  ;;  %v2086_v37 = vsel %vm1229_vm4, %v2081_v4, 0  ;;  %v2743_v4 = vld [vmem:[%s4096_s30] ss:$0 sm:$0xff] }
 0xa64   : > { %2962 = vmatpush3.bf16.msra.mxu1 %v2086_v37  ;;  %3118 = vrcp.f32 %v2022_v7 }
 0xa65   : > { %2973 = vmatprep.subr.bf16.mxu1 %v3320_v3 }
 0xa70   : > { %v3117_v49 = vpop.eup %3116 }
 0xa71   : > { %v2023_v22 = vsel %vm1109_vm3, %v3117_v49, 0.0  ;;  %v3119_v42 = vpop.eup %3118 }
 0xa72   : > { %2024 = vadd.xlane.f32.xlu0 %v2023_v22  ;;  %v2027_v9 = vmul.f32 %v3119_v42, %v3115_v51  ;;  %v3087_v42 = vld [vmem:[%s3654_s22 + $0x10] sm:$0xff]  }
 0xa74   : > { %v2030_v12 = vpack.c.bf16 %v2027_v9, %v2027_v9  ;;  %v3089_v9 = vld [vmem:[%s3654_s22] sm:$0xff]  }
 0xa88   : > { %2032 = vrot.lane.b32.xlu0 %v3741_v41, %s3324_s26 }
 0xafb   : > { %v2025_v8 = vpop.xlane.xlu0 %2024 }
 0xafc   : > { %3120 = vrcp.f32 %v2025_v8  ;;  %v3088_v8 = vld [vmem:[%s3654_s22 + $0x8] sm:$0xff]  }
 0xaff   : > { %v2033_v10 = vpop.permute.xlu0 %2032 }
 0xb00   : > { %v2038_v11 = vsel %vm1229_vm4, %v2033_v10, 0  ;;  %v2744_v10 = vld [vmem:[%s851_s20] ss:$0 sm:$0xff] }
 0xb01   : > { %2956 = vmatpush3.bf16.msra.mxu0 %v2038_v11 }
 0xb02   : > { %2967 = vmatprep.subr.bf16.mxu0 %v3320_v3 }
 0xb04   : > { %2958 = vmatmul.mubr.msk.bf16.vlgmr.msra.gmra.mxu0 %vm1109_vm3, %v2030_v12 }
 0xb05   : > { %2969 = vmatprep.mubr.msk.bf16.mxu0 %vm3321_vm1, %v3320_v3  ;;  %2968 = vmatpush3.bf16.msra.mxu0 %v2134_v16 }
 0xb06   : > { %2981 = vmatprep.subr.bf16.mxu0 %v3320_v3 }
 0xb09   : > { %v3121_v41 = vpop.eup %3120 }
 0xb0a   : > { %v2029_v13 = vmul.f32 %v3121_v41, %v3117_v49 }
 0xb0c   : > { %v2031_v14 = vpack.c.bf16 %v2029_v13, %v2029_v13 }
 0xb0e   : > { %2964 = vmatmul.mubr.msk.bf16.vlgmr.msra.gmra.mxu1 %vm1109_vm3, %v2031_v14 }
 0xb0f   : > { %2977 = vmatprep.mubr.msk.bf16.mxu1 %vm3321_vm1, %v3320_v3 }
 0xbc4   : > { %v2074_v17 = vpop.f32.mrf.mxu0 }
 0xbc6   : > { %v2959_v18 = vpop.f32.mrf.mxu0 }
 0xbc8   : > { %v2077_v19 = vpop.f32.mrf.mxu0 }
 0xbca   : > { %v2960_v31 = vpop.f32.mrf.mxu0 }
 0xbce   : > { %v2122_v20 = vpop.f32.mrf.mxu1 }
 0xbcf   : > { %v2128_v21 = vpack.c.bf16 %v2122_v20, %v2074_v17 }
 0xbd0   : > { %v2965_v23 = vpop.f32.mrf.mxu1 }
 0xbd1   : > { %2970 = vmatmul.mubr.msk.bf16.vlgmr.msra.gmra.mxu0 %vm1109_vm3, %v2128_v21 }
 0xbd2   : > { %v2125_v24 = vpop.f32.mrf.mxu1  ;;  %2989 = vmatprep.mubr.msk.bf16.mxu0 %vm3321_vm1, %v3320_v3  ;;  %2982 = vmatpush3.bf16.msra.mxu0 %v3086_v57 }
 0xbd3   : > { %2983 = vmatprep.subr.bf16.mxu0 %v3320_v3 }
 0xbd4   : > { %v2966_v25 = vpop.f32.mrf.mxu1 }
 0xbd6   : > { %2984 = vmatpush3.bf16.msra.mxu0 %v3087_v42 }
 0xbd7   : > { %2985 = vmatprep.subr.bf16.mxu0 %v3320_v3 }
 0xbda   : > { %2986 = vmatpush3.bf16.msra.mxu0 %v3088_v8 }
 0xbdb   : > { %2987 = vmatprep.subr.bf16.mxu0 %v3320_v3 }
 0xbde   : > { %2988 = vmatpush3.bf16.msra.mxu0 %v3089_v9 }
 0xc91   : > { %v2170_v26 = vpop.f32.mrf.mxu0 }
 0xc92   : > { %v2177_v28 = vadd.f32 %v2170_v26, %v1906_v56 }
 0xc93   : > { %v2971_v30 = vpop.f32.mrf.mxu0 }
 0xc94   : > { %v2186_v32 = vadd.f32 %v2741_v27, %v2177_v28 }
 0xc95   : > { %v2173_v35 = vpop.f32.mrf.mxu0 }
 0xc96   : > { %v2178_v36 = vadd.f32 %v2173_v35, %v1907_v58  ;;  %v2188_v38 = vadd.f32 %v2186_v32, %v3675_v5 }
 0xc97   : > { %v2972_v39 = vpop.f32.mrf.mxu0 }
 0xc98   : > { %v2187_v40 = vadd.f32 %v2741_v27, %v2178_v36  ;;  %v2190_v43 = vsel %vm902_vm2, %v2188_v38, 0.0 }
 0xc99   : > { %2191 = vadd.xlane.f32.xlu1 %v2190_v43 }
 0xc9a   : > { %v2189_v44 = vadd.f32 %v2187_v40, %v3677_v6  ;;  %v3084_v6 = vld [vmem:[%s713_s12 + $0x8] sm:$0xff]  }
 0xc9b   : > { %2974 = vmatpush3.bf16.msra.mxu1 %v3084_v6 }
 0xc9c   : > { %v2193_v45 = vsel %vm902_vm2, %v2189_v44, 0.0  ;;  %2975 = vmatprep.subr.bf16.mxu1 %v3320_v3  ;;  %v2748_v3 = vld [vmem:[%s859_s9] ss:$0 sm:$0xff] }
 0xc9d   : > { %2194 = vadd.xlane.f32.xlu0 %v2193_v45 }
 0xc9f   : > { %2976 = vmatpush3.bf16.msra.mxu1 %v3085_v29 }
 0xd22   : > { %v2192_v46 = vpop.xlane.xlu1 %2191 }
 0xd23   : > { %v2197_v47 = vmul.f32 0.03125, %v2192_v46 }
 0xd25   : > { %v2199_v48 = vsub.f32 %v2188_v38, %v2197_v47 }
 0xd26   : > { %v2195_v50 = vpop.xlane.xlu0 %2194 }
 0xd27   : > { %v2198_v51 = vmul.f32 0.03125, %v2195_v50  ;;  %v2201_v52 = vmul.f32 %v2199_v48, %v2199_v48 }
 0xd29   : > { %v2200_v5 = vsub.f32 %v2189_v44, %v2198_v51  ;;  %v2203_v53 = vsel %vm902_vm2, %v2201_v52, 0.0 }
 0xd2a   : > { %2204 = vadd.xlane.f32.xlu0 %v2203_v53  ;;  %v2754_v53 = vld [vmem:[%s862_s4] ss:$0 sm:$0xff]  ;;  %s3238_s4 = scalar_lea.vmem %s2447_s21, 256 }
 0xd2b   : > { %v2202_v55 = vmul.f32 %v2200_v5, %v2200_v5  ;;  %p3239_p6 = scmp.ne.s32.totalorder %s2447_s21, %s3238_s4  ;;  %p3246_p9 = scmp.lt.s32.totalorder %s3238_s4, %s3238_s4 }
 0xd2d   : > { %v2206_v56 = vsel %vm902_vm2, %v2202_v55, 0.0  ;;  %p3240_p7 = pnand %p3239_p6, %p3028_p3  ;;  %p3247_p5 = por %p3246_p9, %p3245_p4 }
 0xd2e   : > { %2207 = vadd.xlane.f32.xlu1 %v2206_v56  ;;  %v2755_v56 = vld [vmem:[%s865_s25] ss:$0 sm:$0xff] }
 0xd2f   : > { %p3241_p11 = pneg %p3240_p7 }
 0xd31   : > { %p3248_p2 = pnand %p3247_p5, %p3241_p11 }
 0xdb3   : > { %v2205_v33 = vpop.xlane.xlu0 %2204 }
 0xdb4   : > { %v2209_v58 = vmul.f32 0.03125, %v2205_v33 }
 0xdb6   : > { %v2211_v59 = vadd.f32 1e-05, %v2209_v58 }
 0xdb7   : > { %v2208_v60 = vpop.xlane.xlu1 %2207 }
 0xdb8   : > { %3122 = vrsqrt.f32 %v2211_v59  ;;  %v2210_v61 = vmul.f32 0.03125, %v2208_v60 }
 0xdba   : > { %v2212_v62 = vadd.f32 1e-05, %v2210_v61 }
 0xdbc   : > { %3124 = vrsqrt.f32 %v2212_v62 }
 0xdc5   : > { %v3123_v63 = vpop.eup %3122 }
 0xdc6   : > { %v2215_v0 = vmul.f32 %v3123_v63, %v2199_v48 }
 0xdc8   : > { %v2224_v2 = vmul.f32 %v2742_v1, %v2215_v0 }
 0xdc9   : > { %v3125_v34 = vpop.eup %3124 }
 0xdca   : > { %v2216_v54 = vmul.f32 %v3125_v34, %v2200_v5  ;;  %v2233_v49 = vadd.f32 %v2743_v4, %v2224_v2 }
 0xdcc   : > { %v2225_v37 = vmul.f32 %v2742_v1, %v2216_v54 }
 0xdce   : > { %v2234_v22 = vadd.f32 %v2743_v4, %v2225_v37 }
 0xdd0   : > { %v2235_v7 = vpack.c.bf16 %v2234_v22, %v2233_v49 }
 0xdd2   : > { %2978 = vmatmul.mubr.msk.bf16.vlgmr.msra.gmra.mxu1 %vm902_vm2, %v2235_v7 }
 0xe92   : > { %v2296_v11 = vpop.f32.mrf.mxu1 }
 0xe93   : > { %v2297_v41 = vadd.f32 %v2744_v10, %v2296_v11 }
 0xe94   : > { %v2979_v12 = vpop.f32.mrf.mxu1 }
 0xe95   : > { %v2303_v16 = vmax.f32 %v2297_v41, 0.0 }
 0xe96   : > { %v2299_v13 = vpop.f32.mrf.mxu1 }
 0xe97   : > { %v2300_v14 = vadd.f32 %v2744_v10, %v2299_v13 }
 0xe98   : > { %v2980_v15 = vpop.f32.mrf.mxu1 }
 0xe99   : > { %v2304_v17 = vmax.f32 %v2300_v14, 0.0 }
 0xe9b   : > { %v2305_v18 = vpack.c.bf16 %v2304_v17, %v2303_v16 }
 0xe9d   : > { %2990 = vmatmul.mubr.msk.bf16.vlgmr.msra.gmra.mxu0 %vm2345_vm5, %v2305_v18 }
 0xf5d   : > { %v2383_v19 = vpop.f32.mrf.mxu0 }
 0xf5e   : > { %v2384_v31 = vadd.f32 %v2748_v3, %v2383_v19 }
 0xf5f   : > { %v2991_v20 = vpop.f32.mrf.mxu0 }
 0xf60   : > { %v2390_v21 = vadd.f32 %v2384_v31, %v2233_v49 }
 0xf61   : > { %v2386_v23 = vpop.f32.mrf.mxu0 }
 0xf62   : > { %v2387_v24 = vadd.f32 %v2748_v3, %v2386_v23  ;;  %v2392_v25 = vsel %vm902_vm2, %v2390_v21, 0.0 }
 0xf63   : > { %2393 = vadd.xlane.f32.xlu0 %v2392_v25  ;;  %v2992_v26 = vpop.f32.mrf.mxu0 }
 0xf64   : > { %v2391_v27 = vadd.f32 %v2387_v24, %v2234_v22 }
 0xf66   : > { %v2395_v28 = vsel %vm902_vm2, %v2391_v27, 0.0 }
 0xf67   : > { %2396 = vadd.xlane.f32.xlu1 %v2395_v28 }
 0xfec   : > { %v2394_v30 = vpop.xlane.xlu0 %2393 }
 0xfed   : > { %v2398_v32 = vmul.f32 0.03125, %v2394_v30 }
 0xfef   : > { %v2400_v35 = vsub.f32 %v2390_v21, %v2398_v32 }
 0xff0   : > { %v2397_v36 = vpop.xlane.xlu1 %2396 }
 0xff1   : > { %v2399_v38 = vmul.f32 0.03125, %v2397_v36  ;;  %v2402_v39 = vmul.f32 %v2400_v35, %v2400_v35 }
 0xff3   : > { %v2401_v40 = vsub.f32 %v2391_v27, %v2399_v38  ;;  %v2404_v43 = vsel %vm902_vm2, %v2402_v39, 0.0 }
 0xff4   : > { %2405 = vadd.xlane.f32.xlu0 %v2404_v43 }
 0xff5   : > { %v2403_v44 = vmul.f32 %v2401_v40, %v2401_v40 }
 0xff7   : > { %v2407_v45 = vsel %vm902_vm2, %v2403_v44, 0.0 }
 0xff8   : > { %2408 = vadd.xlane.f32.xlu1 %v2407_v45 }
0x107d   : > { %v2406_v46 = vpop.xlane.xlu0 %2405 }
0x107e   : > { %v2410_v47 = vmul.f32 0.03125, %v2406_v46 }
0x1080   : > { %v2412_v48 = vadd.f32 1e-05, %v2410_v47 }
0x1081   : > { %v2409_v50 = vpop.xlane.xlu1 %2408 }
0x1082   : > { %3126 = vrsqrt.f32 %v2412_v48  ;;  %v2411_v51 = vmul.f32 0.03125, %v2409_v50 }
0x1084   : > { %v2413_v52 = vadd.f32 1e-05, %v2411_v51 }
0x1086   : > { %3128 = vrsqrt.f32 %v2413_v52 }
0x108f   : > { %v3127_v5 = vpop.eup %3126 }
0x1090   : > { %v2416_v55 = vmul.f32 %v3127_v5, %v2400_v35 }
0x1092   : > { %v2425_v6 = vmul.f32 %v2754_v53, %v2416_v55 }
0x1093   : > { %v3129_v29 = vpop.eup %3128 }
0x1094   : > { %v2417_v57 = vmul.f32 %v3129_v29, %v2401_v40  ;;  %v2434_v33 = vadd.f32 %v2755_v56, %v2425_v6 }
0x1096   : > { %v2426_v58 = vmul.f32 %v2754_v53, %v2417_v57  ;;  %2436 = vst.msk [vmem:[#allocation2] sm:$0xff] %vm902_vm2, %v2434_v33  ;;  %2438 = vst.msk [vmem:[#allocation10] sm:$0xff] %vm902_vm2, %v2434_v33 }
0x1098   : > { %v2435_v59 = vadd.f32 %v2755_v56, %v2426_v58 }
0x109a   : > { %2437 = vst.msk [vmem:[#allocation2 + $0x8] sm:$0xff] %vm902_vm2, %v2435_v59  ;;  %2439 = vst.msk [vmem:[#allocation10 + $0x8] sm:$0xff] %vm902_vm2, %v2435_v59 }
0x109b   : > { %3251 = shalt.err (!%p3248_p2)
}
0x109c   : > { %s3326_s27 = smov 128   ;;  %s3327_s25 = smov 8  }
0x109d   : > { %s4101_s18 = sld [smem:[#allocation34_spill]] }
0x10a3   : > { %3006 = dma.vmem_to_hbm [thread:$0]  (%p3028_p3), %s2447_s21, 256, %s4101_s18, [#allocation5], %s3326_s27, %s3326_s27, %s3327_s25  }
0x10a4   : > { %3291 = dma.done.wait (%p3028_p3), [#allocation5], 256  }
0x10a5   : > { %3293 = vsyncadd (%p3028_p3), [#allocation5], 4294967040 }
0x10a6 PF: > { %s4102_s30 = sld [smem:[#allocation17_spill]] }
0x10a7   : > { %s4103_s27 = sld [smem:[#allocation15_spill]] }
0x10a8   : > { %s4104_s28 = sld [smem:[#allocation16_spill]] }
0x10a9   : > { %s4105_s29 = sld [smem:[#allocation18_spill]] }
0x10ac   : > { %p28_p12 = scmp.ge.s32.totalorder %s4102_s30, 4  }
0x10ae   :  { %30 = sbr.rel (!%p28_p12) target bundleno = 21 (0x15), region = 193 }
0x10b3   :  { %2462 = vsyncpa [#allocation4], 1 }
0x10b4   :  { %2464 = vsyncpa [#allocation4 + $0x1], 1 }
0x10b5   :  { %2465 = vsyncpa [#allocation7], 1 }
0x10b6   :  { %2466 = vsyncpa [#allocation5], 1 }
0x10b7   :  { %2468 = vsyncpa [#allocation5 + $0x1], 1 }

</bundles_post_ra>
